<compile_context>
chip_gen: v7x
topology: tpu7x:2x2x1
jax: 0.10.0
libtpu: 0.0.40
codegen_flags: <defaults>
</compile_context>

<pallas_src>
import functools

import jax
import jax.numpy as jnp
import numpy as np
from jax import lax
from jax.experimental import pallas as pl
from jax.experimental.pallas import tpu as pltpu


def _attention_kernel(x_ref, wq_ref, wk_ref, wv_ref, wout_ref, bout_ref,
                      o_ref, stage_ref, *, scale, group, dim_head):
    # x_ref:     (1, N, D)                  current batch element
    # wq/wk/wv:  (n_groups, D, group*Dh)    resident group-major projections
    # wout_ref:  (inner, D)                 resident output projection
    # bout_ref:  (1, D)
    # o_ref:     (1, N, D)
    # stage_ref: (n_groups, N, group*Dh)    staged per-group attention outputs
    n_groups = stage_ref.shape[0]
    x = x_ref[0]                                            # (N, D), native dtype

    def group_body(g, carry):
        # Grouped projections: one (N, D) @ (D, group*Dh) MXU matmul each
        # (f32 accumulation, operands in native dtype).  The softmax scale is
        # folded into q once here (N*group*Dh muls instead of N*N per head).
        q_g = (jnp.dot(x, wq_ref[g], preferred_element_type=jnp.float32)
               * scale).astype(x.dtype)                     # (N, group*Dh)
        k_g = jnp.dot(x, wk_ref[g],
                      preferred_element_type=jnp.float32).astype(x.dtype)
        v_g = jnp.dot(x, wv_ref[g],
                      preferred_element_type=jnp.float32).astype(x.dtype)

        outs = []
        for j in range(group):                              # static unroll inside group
            sl = slice(j * dim_head, (j + 1) * dim_head)    # static lane slice
            q = q_g[:, sl]
            k = k_g[:, sl]
            v = v_g[:, sl]

            # Scores q @ k^T without materializing a transpose: contract on Dh.
            s = lax.dot_general(q, k, (((1,), (1,)), ((), ())),
                                preferred_element_type=jnp.float32)  # (N, N) f32

            # Numerically-stable softmax; normalization deferred past the PV
            # matmul and applied exactly (no approx reciprocal).
            s = s - jnp.max(s, axis=-1, keepdims=True)
            p = jnp.exp(s)
            denom = jnp.sum(p, axis=-1, keepdims=True)               # (N, 1)

            o = jnp.dot(p.astype(x.dtype), v,
                        preferred_element_type=jnp.float32)          # (N, Dh) f32
            outs.append((o / denom).astype(x.dtype))

        stage_ref[g] = (jnp.concatenate(outs, axis=-1) if group > 1
                        else outs[0])                       # (N, group*Dh)
        return carry

    lax.fori_loop(0, n_groups, group_body, 0, unroll=True)

    # Single wide output projection: (N, inner) @ (inner, D) -> full MXU
    # contraction depth, result (plus bias) written straight to o_ref.
    if n_groups > 1:
        heads_out = jnp.concatenate([stage_ref[g] for g in range(n_groups)],
                                    axis=-1)                # (N, inner)
    else:
        heads_out = stage_ref[0]
    out = jnp.dot(heads_out, wout_ref[...],
                  preferred_element_type=jnp.float32)       # (N, D) f32
    out = out + bout_ref[...].astype(jnp.float32)
    o_ref[...] = out[None].astype(o_ref.dtype)


def _head_group(heads, dim_head, target_lanes=256):
    """Largest group size dividing `heads` with group*dim_head <= target_lanes.

    256 lanes targets the v6e/v7x MXU width; pass target_lanes=128 on v5e.
    """
    g = max(1, min(heads, target_lanes // max(dim_head, 1)))
    while heads % g:
        g -= 1
    return g


def attention_pallas(x, w_qkv, w_out, b_out, *, heads, dim_head,
                     head_group=None, vmem_limit_bytes=64 * 1024 * 1024):
    b, n, d = x.shape
    inner = heads * dim_head
    assert w_qkv.shape == (d, 3 * inner)
    assert w_out.shape == (inner, d)
    assert b_out.shape == (1, d)
    scale = float(dim_head) ** -0.5

    group = head_group or _head_group(heads, dim_head)
    assert heads % group == 0
    n_groups = heads // group

    # One-time layout plumbing in the wrapper: stack projection weights
    # group-major (n_groups, D, group*Dh) so the kernel only indexes the
    # leading (non-lane) axis.  w_out stays (inner, D); the in-kernel concat of
    # head outputs reproduces the 'b h n d -> b n (h d)' ordering exactly.
    wq, wk, wv = jnp.split(w_qkv, 3, axis=-1)               # (D, inner) each

    def grouped(w):                                         # (D, inner) -> (G, D, group*Dh)
        return w.reshape(d, n_groups, group * dim_head).transpose(1, 0, 2)

    wq_g, wk_g, wv_g = grouped(wq), grouped(wk), grouped(wv)

    kernel = functools.partial(_attention_kernel, scale=scale, group=group,
                               dim_head=dim_head)
    const3 = lambda i: (0, 0, 0)                            # resident weights
    return pl.pallas_call(
        kernel,
        out_shape=jax.ShapeDtypeStruct((b, n, d), x.dtype),
        grid_spec=pltpu.PrefetchScalarGridSpec(
            num_scalar_prefetch=0,
            grid=(b,),
            in_specs=[
                pl.BlockSpec((1, n, d), lambda i: (i, 0, 0)),              # x
                pl.BlockSpec((n_groups, d, group * dim_head), const3),     # w_q
                pl.BlockSpec((n_groups, d, group * dim_head), const3),     # w_k
                pl.BlockSpec((n_groups, d, group * dim_head), const3),     # w_v
                pl.BlockSpec((inner, d), lambda i: (0, 0)),                # w_out
                pl.BlockSpec((1, d), lambda i: (0, 0)),                    # b_out
            ],
            out_specs=pl.BlockSpec((1, n, d), lambda i: (i, 0, 0)),
            scratch_shapes=[
                pltpu.VMEM((n_groups, n, group * dim_head), x.dtype),      # staged heads
            ],
        ),
        compiler_params=pltpu.CompilerParams(
            dimension_semantics=("parallel",),
            vmem_limit_bytes=vmem_limit_bytes),
    )(x, wq_g, wk_g, wv_g, w_out, b_out)


def attention_reference(x, w_qkv, w_out, b_out, *, heads, dim_head):
    """Pure-JAX reference mirroring the PyTorch forward."""
    b, n, d = x.shape
    inner = heads * dim_head
    scale = float(dim_head) ** -0.5
    qkv = jnp.einsum('bnd,de->bne', x, w_qkv)
    q, k, v = jnp.split(qkv, 3, axis=-1)

    def to_heads(t):  # 'b n (h d) -> b h n d'
        return t.reshape(b, n, heads, dim_head).transpose(0, 2, 1, 3)

    q, k, v = map(to_heads, (q, k, v))
    dots = jnp.einsum('bhid,bhjd->bhij', q, k) * scale
    attn = jax.nn.softmax(dots, axis=-1)
    out = jnp.einsum('bhij,bhjd->bhid', attn, v)
    out = out.transpose(0, 2, 1, 3).reshape(b, n, inner)    # 'b h n d -> b n (h d)'
    return jnp.einsum('bne,ed->bnd', out, w_out) + b_out[0]


if __name__ == "__main__":
    # Small shapes consistent with the module's defaults (heads=8, dim_head=64),
    # short sequence/batch so the script stays tiny.  This also exercises both
    # the grouped fori_loop (2 groups of 4 heads) and the wide output projection.
    # NOTE: perf conclusions only manifest at realistic ViT shapes
    # (e.g. B>=32, N=197/1024, D=768); this harness is a correctness check.
    B, N, DIM = 2, 8, 64
    HEADS, DIM_HEAD = 8, 64
    INNER = HEADS * DIM_HEAD

    key = jax.random.PRNGKey(0)
    kx, kq, ko, kb = jax.random.split(key, 4)
    x = jax.random.normal(kx, (B, N, DIM), dtype=jnp.float32)
    # Deterministic synthetic parameters (shapes from nn.Linear in __init__),
    # stored pre-transposed: y = x @ W.  Dropout(p=0.0) is an identity.
    w_qkv = jax.random.normal(kq, (DIM, 3 * INNER), dtype=jnp.float32) * 0.05
    w_out = jax.random.normal(ko, (INNER, DIM), dtype=jnp.float32) * 0.05
    b_out = jax.random.normal(kb, (1, DIM), dtype=jnp.float32) * 0.05

    out = attention_pallas(x, w_qkv, w_out, b_out,
                           heads=HEADS, dim_head=DIM_HEAD)
    out = jax.block_until_ready(out)

    ref = attention_reference(x, w_qkv, w_out, b_out,
                              heads=HEADS, dim_head=DIM_HEAD)
    np.testing.assert_allclose(np.asarray(out), np.asarray(ref),
                               rtol=2e-3, atol=2e-3)
    print("KERNEL_OK")
</pallas_src>

<mosaic_0001>
module attributes {stable_mosaic.version = 11 : i64} {
  func.func @_attention_kernel(%arg0: i32, %arg1: memref<1x8x64xf32, #tpu.memory_space<vmem>>, %arg2: memref<2x64x256xf32, #tpu.memory_space<vmem>>, %arg3: memref<2x64x256xf32, #tpu.memory_space<vmem>>, %arg4: memref<2x64x256xf32, #tpu.memory_space<vmem>>, %arg5: memref<512x64xf32, #tpu.memory_space<vmem>>, %arg6: memref<1x64xf32, #tpu.memory_space<vmem>>, %arg7: memref<1x8x64xf32, #tpu.memory_space<vmem>>, %arg8: memref<2x8x256xf32, #tpu.memory_space<vmem>>) attributes {dimension_semantics = [#tpu.dimension_semantics<parallel>], iteration_bounds = array<i64: 2>, scalar_prefetch = 0 : i64, scratch_operands = 1 : i64, tpu.core_type = #tpu.core_type<tc>, window_params = [{transform_indices = @transform_0, window_bounds = array<i64: 1, 8, 64>}, {pipeline_mode = #tpu.pipeline_mode<synchronous>, transform_indices = @transform_1, window_bounds = array<i64: 2, 64, 256>}, {pipeline_mode = #tpu.pipeline_mode<synchronous>, transform_indices = @transform_2, window_bounds = array<i64: 2, 64, 256>}, {pipeline_mode = #tpu.pipeline_mode<synchronous>, transform_indices = @transform_3, window_bounds = array<i64: 2, 64, 256>}, {pipeline_mode = #tpu.pipeline_mode<synchronous>, transform_indices = @transform_4, window_bounds = array<i64: 512, 64>}, {pipeline_mode = #tpu.pipeline_mode<synchronous>, transform_indices = @transform_5, window_bounds = array<i64: 1, 64>}, {transform_indices = @transform_6, window_bounds = array<i64: 1, 8, 64>}]} {
    %c0 = arith.constant 0 : index
    %c0_0 = arith.constant 0 : index
    %c0_1 = arith.constant 0 : index
    %0 = vector.load %arg1[%c0, %c0_0, %c0_1] : memref<1x8x64xf32, #tpu.memory_space<vmem>>, vector<1x8x64xf32>
    %1 = vector.shape_cast %0 : vector<1x8x64xf32> to vector<8x64xf32>
    %c0_i32 = arith.constant 0 : i32
    %2 = arith.index_cast %c0_i32 : i32 to index
    %c0_2 = arith.constant 0 : index
    %c0_3 = arith.constant 0 : index
    %3 = vector.load %arg2[%2, %c0_2, %c0_3] : memref<2x64x256xf32, #tpu.memory_space<vmem>>, vector<1x64x256xf32>
    %4 = vector.shape_cast %3 : vector<1x64x256xf32> to vector<64x256xf32>
    %cst = arith.constant dense<0.000000e+00> : vector<8x256xf32>
    %5 = tpu.matmul %1, %4, %cst {dimension_numbers = #tpu.dot_dimension_numbers<[1], [0], [0], [1], [0, 0, 1, 1], [], []>} : vector<8x64xf32>, vector<64x256xf32>, vector<8x256xf32> -> vector<8x256xf32>
    %cst_4 = arith.constant 1.250000e-01 : f32
    %6 = vector.broadcast %cst_4 : f32 to vector<8x256xf32>
    %7 = arith.mulf %5, %6 : vector<8x256xf32>
    %8 = arith.index_cast %c0_i32 : i32 to index
    %c0_5 = arith.constant 0 : index
    %c0_6 = arith.constant 0 : index
    %9 = vector.load %arg3[%8, %c0_5, %c0_6] : memref<2x64x256xf32, #tpu.memory_space<vmem>>, vector<1x64x256xf32>
    %10 = vector.shape_cast %9 : vector<1x64x256xf32> to vector<64x256xf32>
    %cst_7 = arith.constant dense<0.000000e+00> : vector<8x256xf32>
    %11 = tpu.matmul %1, %10, %cst_7 {dimension_numbers = #tpu.dot_dimension_numbers<[1], [0], [0], [1], [0, 0, 1, 1], [], []>} : vector<8x64xf32>, vector<64x256xf32>, vector<8x256xf32> -> vector<8x256xf32>
    %12 = arith.index_cast %c0_i32 : i32 to index
    %c0_8 = arith.constant 0 : index
    %c0_9 = arith.constant 0 : index
    %13 = vector.load %arg4[%12, %c0_8, %c0_9] : memref<2x64x256xf32, #tpu.memory_space<vmem>>, vector<1x64x256xf32>
    %14 = vector.shape_cast %13 : vector<1x64x256xf32> to vector<64x256xf32>
    %cst_10 = arith.constant dense<0.000000e+00> : vector<8x256xf32>
    %15 = tpu.matmul %1, %14, %cst_10 {dimension_numbers = #tpu.dot_dimension_numbers<[1], [0], [0], [1], [0, 0, 1, 1], [], []>} : vector<8x64xf32>, vector<64x256xf32>, vector<8x256xf32> -> vector<8x256xf32>
    %16 = vector.extract_strided_slice %7 {offsets = [0, 0], sizes = [8, 64], strides = [1, 1]} : vector<8x256xf32> to vector<8x64xf32>
    %17 = vector.extract_strided_slice %11 {offsets = [0, 0], sizes = [8, 64], strides = [1, 1]} : vector<8x256xf32> to vector<8x64xf32>
    %18 = vector.extract_strided_slice %15 {offsets = [0, 0], sizes = [8, 64], strides = [1, 1]} : vector<8x256xf32> to vector<8x64xf32>
    %cst_11 = arith.constant dense<0.000000e+00> : vector<8x8xf32>
    %19 = tpu.matmul %16, %17, %cst_11 {dimension_numbers = #tpu.dot_dimension_numbers<[1], [1], [0], [0], [0, 0, 1, 0], [], []>} : vector<8x64xf32>, vector<8x64xf32>, vector<8x8xf32> -> vector<8x8xf32>
    %cst_12 = arith.constant dense<0xFF800000> : vector<8xf32>
    %20 = vector.multi_reduction <maximumf>, %19, %cst_12 [1] : vector<8x8xf32> to vector<8xf32>
    %21 = vector.shape_cast %20 : vector<8xf32> to vector<8x1xf32>
    %22 = vector.broadcast %21 : vector<8x1xf32> to vector<8x8xf32>
    %23 = arith.subf %19, %22 : vector<8x8xf32>
    %24 = math.exp %23 : vector<8x8xf32>
    %cst_13 = arith.constant dense<0.000000e+00> : vector<8xf32>
    %25 = vector.multi_reduction <add>, %24, %cst_13 [1] : vector<8x8xf32> to vector<8xf32>
    %26 = vector.shape_cast %25 : vector<8xf32> to vector<8x1xf32>
    %cst_14 = arith.constant dense<0.000000e+00> : vector<8x64xf32>
    %27 = tpu.matmul %24, %18, %cst_14 {dimension_numbers = #tpu.dot_dimension_numbers<[1], [0], [0], [1], [0, 0, 1, 1], [], []>} : vector<8x8xf32>, vector<8x64xf32>, vector<8x64xf32> -> vector<8x64xf32>
    %28 = vector.broadcast %26 : vector<8x1xf32> to vector<8x64xf32>
    %29 = arith.divf %27, %28 : vector<8x64xf32>
    %30 = vector.extract_strided_slice %7 {offsets = [0, 64], sizes = [8, 64], strides = [1, 1]} : vector<8x256xf32> to vector<8x64xf32>
    %31 = vector.extract_strided_slice %11 {offsets = [0, 64], sizes = [8, 64], strides = [1, 1]} : vector<8x256xf32> to vector<8x64xf32>
    %32 = vector.extract_strided_slice %15 {offsets = [0, 64], sizes = [8, 64], strides = [1, 1]} : vector<8x256xf32> to vector<8x64xf32>
    %cst_15 = arith.constant dense<0.000000e+00> : vector<8x8xf32>
    %33 = tpu.matmul %30, %31, %cst_15 {dimension_numbers = #tpu.dot_dimension_numbers<[1], [1], [0], [0], [0, 0, 1, 0], [], []>} : vector<8x64xf32>, vector<8x64xf32>, vector<8x8xf32> -> vector<8x8xf32>
    %cst_16 = arith.constant dense<0xFF800000> : vector<8xf32>
    %34 = vector.multi_reduction <maximumf>, %33, %cst_16 [1] : vector<8x8xf32> to vector<8xf32>
    %35 = vector.shape_cast %34 : vector<8xf32> to vector<8x1xf32>
    %36 = vector.broadcast %35 : vector<8x1xf32> to vector<8x8xf32>
    %37 = arith.subf %33, %36 : vector<8x8xf32>
    %38 = math.exp %37 : vector<8x8xf32>
    %cst_17 = arith.constant dense<0.000000e+00> : vector<8xf32>
    %39 = vector.multi_reduction <add>, %38, %cst_17 [1] : vector<8x8xf32> to vector<8xf32>
    %40 = vector.shape_cast %39 : vector<8xf32> to vector<8x1xf32>
    %cst_18 = arith.constant dense<0.000000e+00> : vector<8x64xf32>
    %41 = tpu.matmul %38, %32, %cst_18 {dimension_numbers = #tpu.dot_dimension_numbers<[1], [0], [0], [1], [0, 0, 1, 1], [], []>} : vector<8x8xf32>, vector<8x64xf32>, vector<8x64xf32> -> vector<8x64xf32>
    %42 = vector.broadcast %40 : vector<8x1xf32> to vector<8x64xf32>
    %43 = arith.divf %41, %42 : vector<8x64xf32>
    %44 = vector.extract_strided_slice %7 {offsets = [0, 128], sizes = [8, 64], strides = [1, 1]} : vector<8x256xf32> to vector<8x64xf32>
    %45 = vector.extract_strided_slice %11 {offsets = [0, 128], sizes = [8, 64], strides = [1, 1]} : vector<8x256xf32> to vector<8x64xf32>
    %46 = vector.extract_strided_slice %15 {offsets = [0, 128], sizes = [8, 64], strides = [1, 1]} : vector<8x256xf32> to vector<8x64xf32>
    %cst_19 = arith.constant dense<0.000000e+00> : vector<8x8xf32>
    %47 = tpu.matmul %44, %45, %cst_19 {dimension_numbers = #tpu.dot_dimension_numbers<[1], [1], [0], [0], [0, 0, 1, 0], [], []>} : vector<8x64xf32>, vector<8x64xf32>, vector<8x8xf32> -> vector<8x8xf32>
    %cst_20 = arith.constant dense<0xFF800000> : vector<8xf32>
    %48 = vector.multi_reduction <maximumf>, %47, %cst_20 [1] : vector<8x8xf32> to vector<8xf32>
    %49 = vector.shape_cast %48 : vector<8xf32> to vector<8x1xf32>
    %50 = vector.broadcast %49 : vector<8x1xf32> to vector<8x8xf32>
    %51 = arith.subf %47, %50 : vector<8x8xf32>
    %52 = math.exp %51 : vector<8x8xf32>
    %cst_21 = arith.constant dense<0.000000e+00> : vector<8xf32>
    %53 = vector.multi_reduction <add>, %52, %cst_21 [1] : vector<8x8xf32> to vector<8xf32>
    %54 = vector.shape_cast %53 : vector<8xf32> to vector<8x1xf32>
    %cst_22 = arith.constant dense<0.000000e+00> : vector<8x64xf32>
    %55 = tpu.matmul %52, %46, %cst_22 {dimension_numbers = #tpu.dot_dimension_numbers<[1], [0], [0], [1], [0, 0, 1, 1], [], []>} : vector<8x8xf32>, vector<8x64xf32>, vector<8x64xf32> -> vector<8x64xf32>
    %56 = vector.broadcast %54 : vector<8x1xf32> to vector<8x64xf32>
    %57 = arith.divf %55, %56 : vector<8x64xf32>
    %58 = vector.extract_strided_slice %7 {offsets = [0, 192], sizes = [8, 64], strides = [1, 1]} : vector<8x256xf32> to vector<8x64xf32>
    %59 = vector.extract_strided_slice %11 {offsets = [0, 192], sizes = [8, 64], strides = [1, 1]} : vector<8x256xf32> to vector<8x64xf32>
    %60 = vector.extract_strided_slice %15 {offsets = [0, 192], sizes = [8, 64], strides = [1, 1]} : vector<8x256xf32> to vector<8x64xf32>
    %cst_23 = arith.constant dense<0.000000e+00> : vector<8x8xf32>
    %61 = tpu.matmul %58, %59, %cst_23 {dimension_numbers = #tpu.dot_dimension_numbers<[1], [1], [0], [0], [0, 0, 1, 0], [], []>} : vector<8x64xf32>, vector<8x64xf32>, vector<8x8xf32> -> vector<8x8xf32>
    %cst_24 = arith.constant dense<0xFF800000> : vector<8xf32>
    %62 = vector.multi_reduction <maximumf>, %61, %cst_24 [1] : vector<8x8xf32> to vector<8xf32>
    %63 = vector.shape_cast %62 : vector<8xf32> to vector<8x1xf32>
    %64 = vector.broadcast %63 : vector<8x1xf32> to vector<8x8xf32>
    %65 = arith.subf %61, %64 : vector<8x8xf32>
    %66 = math.exp %65 : vector<8x8xf32>
    %cst_25 = arith.constant dense<0.000000e+00> : vector<8xf32>
    %67 = vector.multi_reduction <add>, %66, %cst_25 [1] : vector<8x8xf32> to vector<8xf32>
    %68 = vector.shape_cast %67 : vector<8xf32> to vector<8x1xf32>
    %cst_26 = arith.constant dense<0.000000e+00> : vector<8x64xf32>
    %69 = tpu.matmul %66, %60, %cst_26 {dimension_numbers = #tpu.dot_dimension_numbers<[1], [0], [0], [1], [0, 0, 1, 1], [], []>} : vector<8x8xf32>, vector<8x64xf32>, vector<8x64xf32> -> vector<8x64xf32>
    %70 = vector.broadcast %68 : vector<8x1xf32> to vector<8x64xf32>
    %71 = arith.divf %69, %70 : vector<8x64xf32>
    %72 = tpu.concatenate %29, %43, %57, %71 in 1 : vector<8x64xf32>, vector<8x64xf32>, vector<8x64xf32>, vector<8x64xf32> -> vector<8x256xf32>
    %73 = arith.index_cast %c0_i32 : i32 to index
    %c0_27 = arith.constant 0 : index
    %c0_28 = arith.constant 0 : index
    %74 = vector.load %arg8[%73, %c0_27, %c0_28] : memref<2x8x256xf32, #tpu.memory_space<vmem>>, vector<1x8x256xf32>
    %75 = vector.shape_cast %74 : vector<1x8x256xf32> to vector<8x256xf32>
    %76 = vector.shape_cast %72 : vector<8x256xf32> to vector<1x8x256xf32>
    tpu.vector_store %arg8[%73, %c0_27, %c0_28], %76 {strides = array<i32>} : memref<2x8x256xf32, #tpu.memory_space<vmem>>, vector<1x8x256xf32>,
    %c1_i32 = arith.constant 1 : i32
    %77 = arith.index_cast %c1_i32 : i32 to index
    %c0_29 = arith.constant 0 : index
    %c0_30 = arith.constant 0 : index
    %78 = vector.load %arg2[%77, %c0_29, %c0_30] : memref<2x64x256xf32, #tpu.memory_space<vmem>>, vector<1x64x256xf32>
    %79 = vector.shape_cast %78 : vector<1x64x256xf32> to vector<64x256xf32>
    %cst_31 = arith.constant dense<0.000000e+00> : vector<8x256xf32>
    %80 = tpu.matmul %1, %79, %cst_31 {dimension_numbers = #tpu.dot_dimension_numbers<[1], [0], [0], [1], [0, 0, 1, 1], [], []>} : vector<8x64xf32>, vector<64x256xf32>, vector<8x256xf32> -> vector<8x256xf32>
    %cst_32 = arith.constant 1.250000e-01 : f32
    %81 = vector.broadcast %cst_32 : f32 to vector<8x256xf32>
    %82 = arith.mulf %80, %81 : vector<8x256xf32>
    %83 = arith.index_cast %c1_i32 : i32 to index
    %c0_33 = arith.constant 0 : index
    %c0_34 = arith.constant 0 : index
    %84 = vector.load %arg3[%83, %c0_33, %c0_34] : memref<2x64x256xf32, #tpu.memory_space<vmem>>, vector<1x64x256xf32>
    %85 = vector.shape_cast %84 : vector<1x64x256xf32> to vector<64x256xf32>
    %cst_35 = arith.constant dense<0.000000e+00> : vector<8x256xf32>
    %86 = tpu.matmul %1, %85, %cst_35 {dimension_numbers = #tpu.dot_dimension_numbers<[1], [0], [0], [1], [0, 0, 1, 1], [], []>} : vector<8x64xf32>, vector<64x256xf32>, vector<8x256xf32> -> vector<8x256xf32>
    %87 = arith.index_cast %c1_i32 : i32 to index
    %c0_36 = arith.constant 0 : index
    %c0_37 = arith.constant 0 : index
    %88 = vector.load %arg4[%87, %c0_36, %c0_37] : memref<2x64x256xf32, #tpu.memory_space<vmem>>, vector<1x64x256xf32>
    %89 = vector.shape_cast %88 : vector<1x64x256xf32> to vector<64x256xf32>
    %cst_38 = arith.constant dense<0.000000e+00> : vector<8x256xf32>
    %90 = tpu.matmul %1, %89, %cst_38 {dimension_numbers = #tpu.dot_dimension_numbers<[1], [0], [0], [1], [0, 0, 1, 1], [], []>} : vector<8x64xf32>, vector<64x256xf32>, vector<8x256xf32> -> vector<8x256xf32>
    %91 = vector.extract_strided_slice %82 {offsets = [0, 0], sizes = [8, 64], strides = [1, 1]} : vector<8x256xf32> to vector<8x64xf32>
    %92 = vector.extract_strided_slice %86 {offsets = [0, 0], sizes = [8, 64], strides = [1, 1]} : vector<8x256xf32> to vector<8x64xf32>
    %93 = vector.extract_strided_slice %90 {offsets = [0, 0], sizes = [8, 64], strides = [1, 1]} : vector<8x256xf32> to vector<8x64xf32>
    %cst_39 = arith.constant dense<0.000000e+00> : vector<8x8xf32>
    %94 = tpu.matmul %91, %92, %cst_39 {dimension_numbers = #tpu.dot_dimension_numbers<[1], [1], [0], [0], [0, 0, 1, 0], [], []>} : vector<8x64xf32>, vector<8x64xf32>, vector<8x8xf32> -> vector<8x8xf32>
    %cst_40 = arith.constant dense<0xFF800000> : vector<8xf32>
    %95 = vector.multi_reduction <maximumf>, %94, %cst_40 [1] : vector<8x8xf32> to vector<8xf32>
    %96 = vector.shape_cast %95 : vector<8xf32> to vector<8x1xf32>
    %97 = vector.broadcast %96 : vector<8x1xf32> to vector<8x8xf32>
    %98 = arith.subf %94, %97 : vector<8x8xf32>
    %99 = math.exp %98 : vector<8x8xf32>
    %cst_41 = arith.constant dense<0.000000e+00> : vector<8xf32>
    %100 = vector.multi_reduction <add>, %99, %cst_41 [1] : vector<8x8xf32> to vector<8xf32>
    %101 = vector.shape_cast %100 : vector<8xf32> to vector<8x1xf32>
    %cst_42 = arith.constant dense<0.000000e+00> : vector<8x64xf32>
    %102 = tpu.matmul %99, %93, %cst_42 {dimension_numbers = #tpu.dot_dimension_numbers<[1], [0], [0], [1], [0, 0, 1, 1], [], []>} : vector<8x8xf32>, vector<8x64xf32>, vector<8x64xf32> -> vector<8x64xf32>
    %103 = vector.broadcast %101 : vector<8x1xf32> to vector<8x64xf32>
    %104 = arith.divf %102, %103 : vector<8x64xf32>
    %105 = vector.extract_strided_slice %82 {offsets = [0, 64], sizes = [8, 64], strides = [1, 1]} : vector<8x256xf32> to vector<8x64xf32>
    %106 = vector.extract_strided_slice %86 {offsets = [0, 64], sizes = [8, 64], strides = [1, 1]} : vector<8x256xf32> to vector<8x64xf32>
    %107 = vector.extract_strided_slice %90 {offsets = [0, 64], sizes = [8, 64], strides = [1, 1]} : vector<8x256xf32> to vector<8x64xf32>
    %cst_43 = arith.constant dense<0.000000e+00> : vector<8x8xf32>
    %108 = tpu.matmul %105, %106, %cst_43 {dimension_numbers = #tpu.dot_dimension_numbers<[1], [1], [0], [0], [0, 0, 1, 0], [], []>} : vector<8x64xf32>, vector<8x64xf32>, vector<8x8xf32> -> vector<8x8xf32>
    %cst_44 = arith.constant dense<0xFF800000> : vector<8xf32>
    %109 = vector.multi_reduction <maximumf>, %108, %cst_44 [1] : vector<8x8xf32> to vector<8xf32>
    %110 = vector.shape_cast %109 : vector<8xf32> to vector<8x1xf32>
    %111 = vector.broadcast %110 : vector<8x1xf32> to vector<8x8xf32>
    %112 = arith.subf %108, %111 : vector<8x8xf32>
    %113 = math.exp %112 : vector<8x8xf32>
    %cst_45 = arith.constant dense<0.000000e+00> : vector<8xf32>
    %114 = vector.multi_reduction <add>, %113, %cst_45 [1] : vector<8x8xf32> to vector<8xf32>
    %115 = vector.shape_cast %114 : vector<8xf32> to vector<8x1xf32>
    %cst_46 = arith.constant dense<0.000000e+00> : vector<8x64xf32>
    %116 = tpu.matmul %113, %107, %cst_46 {dimension_numbers = #tpu.dot_dimension_numbers<[1], [0], [0], [1], [0, 0, 1, 1], [], []>} : vector<8x8xf32>, vector<8x64xf32>, vector<8x64xf32> -> vector<8x64xf32>
    %117 = vector.broadcast %115 : vector<8x1xf32> to vector<8x64xf32>
    %118 = arith.divf %116, %117 : vector<8x64xf32>
    %119 = vector.extract_strided_slice %82 {offsets = [0, 128], sizes = [8, 64], strides = [1, 1]} : vector<8x256xf32> to vector<8x64xf32>
    %120 = vector.extract_strided_slice %86 {offsets = [0, 128], sizes = [8, 64], strides = [1, 1]} : vector<8x256xf32> to vector<8x64xf32>
    %121 = vector.extract_strided_slice %90 {offsets = [0, 128], sizes = [8, 64], strides = [1, 1]} : vector<8x256xf32> to vector<8x64xf32>
    %cst_47 = arith.constant dense<0.000000e+00> : vector<8x8xf32>
    %122 = tpu.matmul %119, %120, %cst_47 {dimension_numbers = #tpu.dot_dimension_numbers<[1], [1], [0], [0], [0, 0, 1, 0], [], []>} : vector<8x64xf32>, vector<8x64xf32>, vector<8x8xf32> -> vector<8x8xf32>
    %cst_48 = arith.constant dense<0xFF800000> : vector<8xf32>
    %123 = vector.multi_reduction <maximumf>, %122, %cst_48 [1] : vector<8x8xf32> to vector<8xf32>
    %124 = vector.shape_cast %123 : vector<8xf32> to vector<8x1xf32>
    %125 = vector.broadcast %124 : vector<8x1xf32> to vector<8x8xf32>
    %126 = arith.subf %122, %125 : vector<8x8xf32>
    %127 = math.exp %126 : vector<8x8xf32>
    %cst_49 = arith.constant dense<0.000000e+00> : vector<8xf32>
    %128 = vector.multi_reduction <add>, %127, %cst_49 [1] : vector<8x8xf32> to vector<8xf32>
    %129 = vector.shape_cast %128 : vector<8xf32> to vector<8x1xf32>
    %cst_50 = arith.constant dense<0.000000e+00> : vector<8x64xf32>
    %130 = tpu.matmul %127, %121, %cst_50 {dimension_numbers = #tpu.dot_dimension_numbers<[1], [0], [0], [1], [0, 0, 1, 1], [], []>} : vector<8x8xf32>, vector<8x64xf32>, vector<8x64xf32> -> vector<8x64xf32>
    %131 = vector.broadcast %129 : vector<8x1xf32> to vector<8x64xf32>
    %132 = arith.divf %130, %131 : vector<8x64xf32>
    %133 = vector.extract_strided_slice %82 {offsets = [0, 192], sizes = [8, 64], strides = [1, 1]} : vector<8x256xf32> to vector<8x64xf32>
    %134 = vector.extract_strided_slice %86 {offsets = [0, 192], sizes = [8, 64], strides = [1, 1]} : vector<8x256xf32> to vector<8x64xf32>
    %135 = vector.extract_strided_slice %90 {offsets = [0, 192], sizes = [8, 64], strides = [1, 1]} : vector<8x256xf32> to vector<8x64xf32>
    %cst_51 = arith.constant dense<0.000000e+00> : vector<8x8xf32>
    %136 = tpu.matmul %133, %134, %cst_51 {dimension_numbers = #tpu.dot_dimension_numbers<[1], [1], [0], [0], [0, 0, 1, 0], [], []>} : vector<8x64xf32>, vector<8x64xf32>, vector<8x8xf32> -> vector<8x8xf32>
    %cst_52 = arith.constant dense<0xFF800000> : vector<8xf32>
    %137 = vector.multi_reduction <maximumf>, %136, %cst_52 [1] : vector<8x8xf32> to vector<8xf32>
    %138 = vector.shape_cast %137 : vector<8xf32> to vector<8x1xf32>
    %139 = vector.broadcast %138 : vector<8x1xf32> to vector<8x8xf32>
    %140 = arith.subf %136, %139 : vector<8x8xf32>
    %141 = math.exp %140 : vector<8x8xf32>
    %cst_53 = arith.constant dense<0.000000e+00> : vector<8xf32>
    %142 = vector.multi_reduction <add>, %141, %cst_53 [1] : vector<8x8xf32> to vector<8xf32>
    %143 = vector.shape_cast %142 : vector<8xf32> to vector<8x1xf32>
    %cst_54 = arith.constant dense<0.000000e+00> : vector<8x64xf32>
    %144 = tpu.matmul %141, %135, %cst_54 {dimension_numbers = #tpu.dot_dimension_numbers<[1], [0], [0], [1], [0, 0, 1, 1], [], []>} : vector<8x8xf32>, vector<8x64xf32>, vector<8x64xf32> -> vector<8x64xf32>
    %145 = vector.broadcast %143 : vector<8x1xf32> to vector<8x64xf32>
    %146 = arith.divf %144, %145 : vector<8x64xf32>
    %147 = tpu.concatenate %104, %118, %132, %146 in 1 : vector<8x64xf32>, vector<8x64xf32>, vector<8x64xf32>, vector<8x64xf32> -> vector<8x256xf32>
    %148 = arith.index_cast %c1_i32 : i32 to index
    %c0_55 = arith.constant 0 : index
    %c0_56 = arith.constant 0 : index
    %149 = vector.load %arg8[%148, %c0_55, %c0_56] : memref<2x8x256xf32, #tpu.memory_space<vmem>>, vector<1x8x256xf32>
    %150 = vector.shape_cast %149 : vector<1x8x256xf32> to vector<8x256xf32>
    %151 = vector.shape_cast %147 : vector<8x256xf32> to vector<1x8x256xf32>
    tpu.vector_store %arg8[%148, %c0_55, %c0_56], %151 {strides = array<i32>} : memref<2x8x256xf32, #tpu.memory_space<vmem>>, vector<1x8x256xf32>,
    %c2_i32 = arith.constant 2 : i32
    %c0_57 = arith.constant 0 : index
    %c0_58 = arith.constant 0 : index
    %c0_59 = arith.constant 0 : index
    %152 = vector.load %arg8[%c0_57, %c0_58, %c0_59] : memref<2x8x256xf32, #tpu.memory_space<vmem>>, vector<1x8x256xf32>
    %153 = vector.shape_cast %152 : vector<1x8x256xf32> to vector<8x256xf32>
    %c1 = arith.constant 1 : index
    %c0_60 = arith.constant 0 : index
    %c0_61 = arith.constant 0 : index
    %154 = vector.load %arg8[%c1, %c0_60, %c0_61] : memref<2x8x256xf32, #tpu.memory_space<vmem>>, vector<1x8x256xf32>
    %155 = vector.shape_cast %154 : vector<1x8x256xf32> to vector<8x256xf32>
    %156 = tpu.concatenate %153, %155 in 1 : vector<8x256xf32>, vector<8x256xf32> -> vector<8x512xf32>
    %c0_62 = arith.constant 0 : index
    %c0_63 = arith.constant 0 : index
    %157 = vector.load %arg5[%c0_62, %c0_63] : memref<512x64xf32, #tpu.memory_space<vmem>>, vector<512x64xf32>
    %cst_64 = arith.constant dense<0.000000e+00> : vector<8x64xf32>
    %158 = tpu.matmul %156, %157, %cst_64 {dimension_numbers = #tpu.dot_dimension_numbers<[1], [0], [0], [1], [0, 0, 1, 1], [], []>} : vector<8x512xf32>, vector<512x64xf32>, vector<8x64xf32> -> vector<8x64xf32>
    %c0_65 = arith.constant 0 : index
    %c0_66 = arith.constant 0 : index
    %159 = vector.load %arg6[%c0_65, %c0_66] : memref<1x64xf32, #tpu.memory_space<vmem>>, vector<1x64xf32>
    %160 = vector.broadcast %159 : vector<1x64xf32> to vector<8x64xf32>
    %161 = arith.addf %158, %160 : vector<8x64xf32>
    %162 = vector.shape_cast %161 : vector<8x64xf32> to vector<1x8x64xf32>
    %c0_67 = arith.constant 0 : index
    %c0_68 = arith.constant 0 : index
    %c0_69 = arith.constant 0 : index
    %163 = vector.load %arg7[%c0_67, %c0_68, %c0_69] : memref<1x8x64xf32, #tpu.memory_space<vmem>>, vector<1x8x64xf32>
    tpu.vector_store %arg7[%c0_67, %c0_68, %c0_69], %162 {strides = array<i32>} : memref<1x8x64xf32, #tpu.memory_space<vmem>>, vector<1x8x64xf32>,
    return
  }
  func.func @transform_0(%arg0: i32) -> (i32, i32, i32) {
    %c0_i32 = arith.constant 0 : i32
    %c0_i32_0 = arith.constant 0 : i32
    %c0_i32_1 = arith.constant 0 : i32
    return %arg0, %c0_i32, %c0_i32_0 : i32, i32, i32
  }
  func.func @transform_1(%arg0: i32) -> (i32, i32, i32) {
    %c0_i32 = arith.constant 0 : i32
    %c0_i32_0 = arith.constant 0 : i32
    %c0_i32_1 = arith.constant 0 : i32
    %c0_i32_2 = arith.constant 0 : i32
    return %c0_i32, %c0_i32_0, %c0_i32_1 : i32, i32, i32
  }
  func.func @transform_2(%arg0: i32) -> (i32, i32, i32) {
    %c0_i32 = arith.constant 0 : i32
    %c0_i32_0 = arith.constant 0 : i32
    %c0_i32_1 = arith.constant 0 : i32
    %c0_i32_2 = arith.constant 0 : i32
    return %c0_i32, %c0_i32_0, %c0_i32_1 : i32, i32, i32
  }
  func.func @transform_3(%arg0: i32) -> (i32, i32, i32) {
    %c0_i32 = arith.constant 0 : i32
    %c0_i32_0 = arith.constant 0 : i32
    %c0_i32_1 = arith.constant 0 : i32
    %c0_i32_2 = arith.constant 0 : i32
    return %c0_i32, %c0_i32_0, %c0_i32_1 : i32, i32, i32
  }
  func.func @transform_4(%arg0: i32) -> (i32, i32) {
    %c0_i32 = arith.constant 0 : i32
    %c0_i32_0 = arith.constant 0 : i32
    %c0_i32_1 = arith.constant 0 : i32
    return %c0_i32, %c0_i32_0 : i32, i32
  }
  func.func @transform_5(%arg0: i32) -> (i32, i32) {
    %c0_i32 = arith.constant 0 : i32
    %c0_i32_0 = arith.constant 0 : i32
    %c0_i32_1 = arith.constant 0 : i32
    return %c0_i32, %c0_i32_0 : i32, i32
  }
  func.func @transform_6(%arg0: i32) -> (i32, i32, i32) {
    %c0_i32 = arith.constant 0 : i32
    %c0_i32_0 = arith.constant 0 : i32
    %c0_i32_1 = arith.constant 0 : i32
    return %arg0, %c0_i32, %c0_i32_0 : i32, i32, i32
  }
}

</mosaic_0001>

<bundles_post_ra>
// kernel: tpu_custom_call.1
= control target key start
LH: loop header
LB: loop body
LE: loop exit
PB: predicated region body
PF: predicated region fallthrough
CT: control target
= control target key end

     0   :  { %11 = vsyncpa [#allocation4], 0  ;;  %s3880_s0 = inlined_call_operand.hbm [shape: f32[2,8,64], index: 0, kind: input, shape index: {}]   ;;  %s3881_s1 = inlined_call_operand.hbm [shape: f32[2,64,256], index: 1, kind: input, shape index: {}]   ;;  %s3882_s2 = inlined_call_operand.hbm [shape: f32[2,64,256], index: 2, kind: input, shape index: {}]   ;;  %s3883_s3 = inlined_call_operand.hbm [shape: f32[2,64,256], index: 3, kind: input, shape index: {}]   ;;  %s3884_s4 = inlined_call_operand.hbm [shape: f32[512,64], index: 4, kind: input, shape index: {}]   ;;  %s3885_s5 = inlined_call_operand.hbm [shape: f32[1,64], index: 5, kind: input, shape index: {}]   ;;  %s3886_s6 = inlined_call_operand.hbm [shape: f32[2,8,64], index: 6, kind: output, shape index: {}]  }
   0x1   :  { %13 = vsyncpa [#allocation4 + $0x1], 0 }
   0x2   :  { %14 = vsyncpa [#allocation7], 0 }
   0x3   :  { %15 = vsyncpa [#allocation10], 0 }
   0x4   :  { %16 = vsyncpa [#allocation13], 0 }
   0x5   :  { %17 = vsyncpa [#allocation5], 0 }
   0x6   :  { %19 = vsyncpa [#allocation5 + $0x1], 0  ;;  %s3390_s21 = smov 0   ;;  %s3392_s22 = smov 0  }
   0x7   :  { %s3394_s23 = smov 0   ;;  %s3396_s24 = smov 0  }
   0x8 LB: > { %s3341_s25 = smov [#allocation6]   ;;  %s3411_s27 = sadd.s32 4294967295, %s3339_s24   ;;  %s3339_s24 = sphi %s3396_s24, %s3911_s24   ;;  %s3335_s23 = sphi %s3394_s23, %s3910_s23   ;;  %s3331_s22 = sphi %s3392_s22, %s3909_s22   ;;  %s3327_s21 = sphi %s3390_s21, %s3908_s21  }
   0x9   : > { %s199_s26 = sshll.u32 %s3341_s25, 4  ;;  %p2551_p0 = scmp.ge.s32.totalorder %s3339_s24, 1  ;;  %s3416_s26 = int_to_ptr.vmem [resolvable:$true] %s199_s26 }
   0xa   : > { %p3887_p1 = scmp.eq.s32.totalorder %s3411_s27, 0  ;;  %p187_p2 = scmp.lt.s32.totalorder %s3339_s24, 3 }
   0xb   : > { %s3342_s29 = smov [#allocation9]   ;;  %s3343_s8 = smov [#allocation8]  }
   0xc   : > { %p3418_p3 = pnand %p2551_p0, %p187_p2  ;;  %s225_s30 = sshll.u32 %s3342_s29, 4  ;;  %s3431_s30 = int_to_ptr.vmem [resolvable:$true] %s225_s30 }
   0xd   : > { %s212_s9 = sshll.u32 %s3343_s8, 4  ;;  %s3091_s12 = scalar_lea.hbm %s3881_s1, 4096  ;;  %s3433_s9 = int_to_ptr.vmem [resolvable:$true] %s212_s9 }
   0xe   : > { %s3890_s28 = scalar_select %p3418_p3, 1, 0 }
   0xf   : > { %p2969_p5 = pneg %p3418_p3  ;;  %p3092_p7 = scmp.ne.s32.totalorder %s3881_s1, %s3091_s12 }
  0x10   : > { %p3098_p11 = scmp.lt.u32.totalorder %s3091_s12, %s3881_s1 }
  0x11   : > { %p3427_p6 = pnand %p2969_p5, %p3887_p1 }
  0x13   : > { %p3443_p8 = pneg %p3427_p6 }
  0x15   : > { %p3094_p9 = pnand %p3443_p8, %p3092_p7 }
  0x17   : > { %p3095_p10 = pneg %p3094_p9 }
  0x19   : > { %p3100_p12 = pnand %p3098_p11, %p3095_p10 }
  0x1b   : > { %3103 = shalt.err (!%p3100_p12)
}
  0x1c   : > { %s3104_s18 = scalar_lea.vmem %s3416_s26, 4096  ;;  %p3112_p5 = scmp.lt.s32.totalorder %s3416_s26, %s3416_s26 }
  0x1d   : > { %p3105_p13 = scmp.ne.s32.totalorder %s3416_s26, %s3104_s18  ;;  %p3113_p4 = scmp.lt.s32.totalorder %s3104_s18, %s3104_s18 }
  0x1f   : > { %p3107_p0 = pnand %p3105_p13, %p3443_p8  ;;  %p3114_p7 = por %p3113_p4, %p3112_p5 }
  0x21   : > { %p3108_p2 = pneg %p3107_p0 }
  0x23   : > { %p3115_p9 = pnand %p3114_p7, %p3108_p2 }
  0x25   : > { %3118 = shalt.err (!%p3115_p9)
}
  0x26   : > { %s3344_s19 = smov 256   ;;  %s3345_s20 = smov 16  }
  0x27   : > { %2972 = dma.hbm_to_vmem [thread:$0]  (!%p3427_p6), %s3881_s1, 4096, %s3416_s26, [#allocation7], %s3344_s19, %s3344_s19, %s3345_s20  }
  0x28   : > { %s3119_s11 = scalar_lea.hbm %s3883_s3, 4096 }
  0x29   : > { %p3120_p4 = scmp.ne.s32.totalorder %s3883_s3, %s3119_s11  ;;  %p3126_p12 = scmp.lt.u32.totalorder %s3119_s11, %s3883_s3 }
  0x2b   : > { %p3122_p10 = pnand %p3120_p4, %p3443_p8 }
  0x2d   : > { %p3123_p11 = pneg %p3122_p10 }
  0x2f   : > { %p3128_p13 = pnand %p3126_p12, %p3123_p11 }
  0x31   : > { %3131 = shalt.err (!%p3128_p13)
}
  0x32   : > { %s3132_s26 = scalar_lea.vmem %s3431_s30, 4096  ;;  %p3140_p7 = scmp.lt.s32.totalorder %s3431_s30, %s3431_s30 }
  0x33   : > { %p3133_p0 = scmp.ne.s32.totalorder %s3431_s30, %s3132_s26  ;;  %p3141_p9 = scmp.lt.s32.totalorder %s3132_s26, %s3132_s26 }
  0x35   : > { %p3135_p2 = pnand %p3133_p0, %p3443_p8  ;;  %p3142_p4 = por %p3141_p9, %p3140_p7 }
  0x37   : > { %p3136_p5 = pneg %p3135_p2 }
  0x39   : > { %p3143_p10 = pnand %p3142_p4, %p3136_p5 }
  0x3b   : > { %3146 = shalt.err (!%p3143_p10)
}
  0x3c   : > { %2978 = dma.hbm_to_vmem [thread:$0]  (!%p3427_p6), %s3883_s3, 4096, %s3431_s30, [#allocation10], %s3344_s19, %s3344_s19, %s3345_s20  }
  0x3d   : > { %s3147_s8 = scalar_lea.hbm %s3882_s2, 4096 }
  0x3e   : > { %p3148_p11 = scmp.ne.s32.totalorder %s3882_s2, %s3147_s8  ;;  %p3154_p0 = scmp.lt.u32.totalorder %s3147_s8, %s3882_s2 }
  0x40   : > { %p3150_p12 = pnand %p3148_p11, %p3443_p8 }
  0x42   : > { %p3151_p13 = pneg %p3150_p12 }
  0x44   : > { %p3156_p2 = pnand %p3154_p0, %p3151_p13 }
  0x46   : > { %3159 = shalt.err (!%p3156_p2)
}
  0x47   : > { %s3160_s30 = scalar_lea.vmem %s3433_s9, 4096  ;;  %p3168_p4 = scmp.lt.s32.totalorder %s3433_s9, %s3433_s9 }
  0x48   : > { %p3161_p5 = scmp.ne.s32.totalorder %s3433_s9, %s3160_s30  ;;  %p3169_p10 = scmp.lt.s32.totalorder %s3160_s30, %s3160_s30 }
  0x4a   : > { %p3163_p7 = pnand %p3161_p5, %p3443_p8  ;;  %p3170_p11 = por %p3169_p10, %p3168_p4 }
  0x4c   : > { %p3164_p9 = pneg %p3163_p7 }
  0x4e   : > { %p3171_p12 = pnand %p3170_p11, %p3164_p9 }
  0x50   : > { %3174 = shalt.err (!%p3171_p12)
}
  0x51   : > { %2975 = dma.hbm_to_vmem [thread:$0]  (!%p3427_p6), %s3882_s2, 4096, %s3433_s9, [#allocation7], %s3344_s19, %s3344_s19, %s3345_s20  }
  0x52   : > { %s3346_s26 = smov [#allocation11]   ;;  %s3175_s29 = scalar_lea.hbm %s3884_s4, 8192 }
  0x53   : > { %s238_s17 = sshll.u32 %s3346_s26, 4  ;;  %p3176_p13 = scmp.ne.s32.totalorder %s3884_s4, %s3175_s29  ;;  %s239_s17 = int_to_ptr.vmem [resolvable:$true] %s238_s17 }
  0x54   : > { %p3182_p5 = scmp.lt.u32.totalorder %s3175_s29, %s3884_s4 }
  0x55   : > { %p3178_p0 = pnand %p3176_p13, %p3443_p8 }
  0x57   : > { %p3179_p2 = pneg %p3178_p0 }
  0x59   : > { %p3184_p7 = pnand %p3182_p5, %p3179_p2 }
  0x5b   : > { %3187 = shalt.err (!%p3184_p7)
}
  0x5c   : > { %s3188_s9 = scalar_lea.vmem %s239_s17, 8192  ;;  %p3196_p11 = scmp.lt.s32.totalorder %s239_s17, %s239_s17 }
  0x5d   : > { %p3189_p9 = scmp.ne.s32.totalorder %s239_s17, %s3188_s9  ;;  %p3197_p12 = scmp.lt.s32.totalorder %s3188_s9, %s3188_s9 }
  0x5f   : > { %p3191_p4 = pnand %p3189_p9, %p3443_p8  ;;  %p3198_p1 = por %p3197_p12, %p3196_p11 }
  0x61   : > { %p3192_p10 = pneg %p3191_p4 }
  0x63   : > { %p3199_p3 = pnand %p3198_p1, %p3192_p10 }
  0x65   : > { %3202 = shalt.err (!%p3199_p3)
}
  0x66   : > { %s3347_s19 = smov 128   ;;  %s3348_s20 = smov 8  }
  0x67   : > { %2981 = dma.hbm_to_vmem [thread:$0]  (!%p3427_p6), %s3884_s4, 8192, %s239_s17, [#allocation10], %s3347_s19, %s3347_s19, %s3348_s20  }
  0x68   : > { %s3349_s14 = smov [#allocation12]   ;;  %s3203_s25 = scalar_lea.hbm %s3885_s5, 16 }
  0x69   : > { %s252_s16 = sshll.u32 %s3349_s14, 4  ;;  %p3204_p1 = scmp.ne.s32.totalorder %s3885_s5, %s3203_s25  ;;  %s253_s16 = int_to_ptr.vmem [resolvable:$true] %s252_s16 }
  0x6a   : > { %p3210_p0 = scmp.lt.u32.totalorder %s3203_s25, %s3885_s5 }
  0x6b   : > { %p3206_p3 = pnand %p3204_p1, %p3443_p8 }
  0x6d   : > { %p3207_p13 = pneg %p3206_p3 }
  0x6f   : > { %p3212_p2 = pnand %p3210_p0, %p3207_p13 }
  0x71   : > { %3215 = shalt.err (!%p3212_p2)
}
  0x72   : > { %s3216_s17 = scalar_lea.vmem %s253_s16, 16  ;;  %s3223_s12 = scalar_lea.vmem %s253_s16, 32 }
  0x73   : > { %p3217_p5 = scmp.ne.s32.totalorder %s253_s16, %s3216_s17  ;;  %p3224_p4 = scmp.lt.s32.totalorder %s253_s16, %s253_s16 }
  0x74   : > { %p3225_p10 = scmp.lt.s32.totalorder %s3223_s12, %s3216_s17 }
  0x75   : > { %p3219_p7 = pnand %p3217_p5, %p3443_p8 }
  0x76   : > { %p3226_p11 = por %p3225_p10, %p3224_p4 }
  0x77   : > { %p3220_p9 = pneg %p3219_p7 }
  0x79   : > { %p3227_p12 = pnand %p3226_p11, %p3220_p9 }
  0x7b   : > { %3230 = shalt.err (!%p3227_p12)
}
  0x7c   : > { %2984 = dma.hbm_to_vmem [thread:$0]  (!%p3427_p6), %s3885_s5, 16, %s253_s16, [#allocation13]  }
  0x7d   : > { %s2550_s15 = sadd.s32 4294967294, %s3339_s24   ;;  %s3557_s7 = sadd.s32 1, %s3339_s24  }
  0x7e   : > { %s32_s20 = sadd.s32 1, %s3335_s23  ;;  %s29_s13 = ssub.s32 %s3339_s24, %s3557_s7 }
  0x7f   : > { %p39_p8 = scmp.ne.s32.totalorder %s3335_s23, %s3331_s22  ;;  %p30_p1 = scmp.eq.s32.totalorder %s29_s13, 0 }
  0x80   : > { %p40_p3 = scmp.eq.s32.totalorder %s3339_s24, 0  ;;  %p45_p13 = scmp.ne.s32.totalorder %s3331_s22, %s3327_s21 }
  0x81   : > { %p174_p0 = scmp.eq.s32.totalorder %s3411_s27, 1  ;;  %p3893_p5 = scmp.eq.s32.totalorder %s3411_s27, 0 }
  0x82   : > { %s3569_s30 = scalar_select %p30_p1, %s3335_s23, %s32_s20  }
  0x83   : > { %p41_p2 = por %p40_p3, %p39_p8  ;;  %p3573_p7 = por %p3893_p5, %p45_p13 }
  0x84   : > { %p3577_p6 = por %p174_p0, %p39_p8  ;;  %p180_p9 = scmp.eq.s32.totalorder %s2550_s15, 1 }
  0x85   : > { %p2998_p4 = scmp.lt.s32.totalorder %s3339_s24, 2  ;;  %s263_s26 = sand.u32 1, %s3335_s23  }
  0x86   : > { %s3895_s16 = scalar_select %p3577_p6, 1, 0 }
  0x87   : > { %p3583_p10 = por %p180_p9, %p45_p13  ;;  %s2558_s25 = sshll.u32 %s263_s26, 3 }
  0x88   : > { %s2559_s29 = sshll.u32 %s3339_s24, 7  ;;  %s267_s17 = scalar_lea.vmem [#allocation3], %s2558_s25 }
  0x89   : > { %s3896_s18 = scalar_select %p3583_p10, 1, 0 }
  0x8a   : > { %s3591_s11 = scalar_lea.hbm %s3880_s0, %s2559_s29  ;;  %s274_s12 = sshll.u32 %s267_s17, 4  ;;  %s3597_s12 = int_to_ptr.vmem [resolvable:$true] %s274_s12 }
  0x8b   : > { %p3593_p11 = pnand %p2998_p4, %p41_p2  ;;  %s264_s19 = scalar_lea.sflag [#allocation4], %s263_s26 }
  0x8c   : > { %s3231_s15 = scalar_lea.hbm %s3591_s11, 128  ;;  %s3236_s25 = scalar_lea.hbm %s3880_s0, 256 }
  0x8d   : > { %p3232_p12 = scmp.ne.s32.totalorder %s3591_s11, %s3231_s15  ;;  %p3233_p8 = pneg %p3593_p11 }
  0x8e   : > { %p3237_p13 = scmp.lt.u32.totalorder %s3591_s11, %s3880_s0  ;;  %p3238_p0 = scmp.lt.u32.totalorder %s3236_s25, %s3231_s15 }
  0x8f   : > { %p3234_p1 = pnand %p3233_p8, %p3232_p12  ;;  %p3240_p5 = scmp.lt.u32.totalorder %s3231_s15, %s3591_s11 }
  0x90   : > { %p3239_p2 = por %p3238_p0, %p3237_p13 }
  0x91   : > { %p3235_p3 = pneg %p3234_p1 }
  0x92   : > { %p3241_p9 = por %p3240_p5, %p3239_p2 }
  0x94   : > { %p3242_p4 = pnand %p3241_p9, %p3235_p3 }
  0x96   : > { %3245 = shalt.err (!%p3242_p4)
}
  0x97   : > { %s3246_s26 = scalar_lea.vmem %s3597_s12, 128  ;;  %s3350_s10 = smov [#allocation3]  }
  0x98   : > { %p3247_p12 = scmp.ne.s32.totalorder %s3597_s12, %s3246_s26  ;;  %s3251_s17 = sshll.u32 %s3350_s10, 4  ;;  %s3252_s17 = int_to_ptr.vmem [resolvable:$false] %s3251_s17 }
  0x99   : > { %s3253_s20 = scalar_lea.vmem %s3252_s17, 256  ;;  %p3254_p6 = scmp.lt.s32.totalorder %s3597_s12, %s3252_s17 }
  0x9a   : > { %p3249_p1 = pnand %p3247_p12, %p3233_p8  ;;  %p3255_p13 = scmp.lt.s32.totalorder %s3253_s20, %s3246_s26 }
  0x9c   : > { %p3250_p10 = pneg %p3249_p1  ;;  %p3256_p0 = por %p3255_p13, %p3254_p6 }
  0x9e   : > { %p3257_p2 = pnand %p3256_p0, %p3250_p10 }
  0xa0   : > { %3260 = shalt.err (!%p3257_p2)
}
  0xa1   : > { %2988 = dma.hbm_to_vmem [thread:$0]  (!%p3593_p11), %s3591_s11, 128, %s3597_s12, %s264_s19  }
  0xa2   : > { %p3898_p3 = scmp.ne.s32.totalorder %s3890_s28, 0 }
  0xa3   : > { %s3627_s15 = sand.u32 (!%p3898_p3), 1, %s3331_s22  }
  0xa4   : > { %283 = sbr.rel (%p3898_p3) target bundleno = 2718 (0xa9e), region = 44  ;;  %s2561_s13 = sshll.u32 (!%p3898_p3), %s3627_s15, 3 }
  0xa5   : > { %s286_s25 = scalar_lea.sflag (!%p3898_p3), [#allocation4], %s3627_s15  ;;  %s3633_s29 = scalar_lea.vmem (!%p3898_p3), [#allocation3], %s2561_s13 }
  0xab   : > { %3306 = dma.done.wait (%p3573_p7), %s286_s25, 128  }
  0xac   : > { %3308 = vsyncadd (%p3573_p7), %s286_s25, 4294967168  ;;  %p3899_p6 = scmp.eq.s32.totalorder %s3411_s27, 0 }
  0xae   : > { %3310 = dma.done.wait (%p3899_p6), [#allocation7], 8192   ;;  %p3900_p10 = pmov %p3899_p6 }
  0xaf   : > { %p3901_p11 = pmov %p3899_p6 }
  0xb0   : > { %3312 = vsyncadd (%p3900_p10), [#allocation7], 4294959104 }
  0xb1   : > { %3314 = dma.done.wait (%p3901_p11), [#allocation10], 12288   ;;  %p3902_p8 = pmov %p3899_p6 }
  0xb2   : > { %p3903_p5 = pmov %p3899_p6 }
  0xb3   : > { %3316 = vsyncadd (%p3902_p8), [#allocation10], 4294955008 }
  0xb4   : > { %3318 = dma.done.wait (%p3903_p5), [#allocation13], 16   ;;  %p3904_p9 = pmov %p3903_p5 }
  0xb5   : > { %v3351_v0 = vmov 0.0   ;;  %v340_v1 = vld [vmem:[#allocation6 + $0x8] sm:$0xff]  ;;  %v342_v2 = vld [vmem:[#allocation6 + $0x18] sm:$0xff]  ;;  %v339_v6 = vld [vmem:[#allocation6] sm:$0xff]  ;;  %vm355_vm0 = vcmask 523264   ;;  %vm3352_vm1 = vmmov 0  }
  0xb6   : > { %3320 = vsyncadd (%p3904_p9), [#allocation13], 4294967280  ;;  %423 = vmatprep.mubr.f32.mxu0 %v3351_v0  ;;  %512 = vmatprep.mubr.f32.mxu1 %v3351_v0  ;;  %v433_v3 = vld [vmem:[#allocation8 + $0x8] sm:$0xff]  ;;  %v2785_v4 = vpack.c.bf16 %v342_v2, %v340_v1  ;;  %v435_v5 = vld [vmem:[#allocation8 + $0x18] sm:$0xff]  ;;  %s3353_s28 = smov 64   ;;  %vm682_vm2 = vcmask 64512  }
  0xb7   : > { %v341_v7 = vld [vmem:[#allocation6 + $0x10] sm:$0xff]  ;;  %v2801_v8 = vpack.c.bf16 %v435_v5, %v433_v3  ;;  %v432_v10 = vld [vmem:[#allocation8] sm:$0xff]  ;;  %v344_v12 = vld [vmem:[#allocation6 + $0x28] sm:$0xff]  ;;  %s2600_s14 = sshll.u32 %s3411_s27, 7  ;;  %s337_s11 = scalar_lea.vmem [#allocation14], %s2561_s13 }
  0xb8   : > { %v2787_v9 = vpack.c.bf16 %v341_v7, %v339_v6  ;;  %v434_v11 = vld [vmem:[#allocation8 + $0x10] sm:$0xff]  ;;  %2786 = vmatprep.subr.bf16.mxu0 %v2785_v4  ;;  %v346_v14 = vld [vmem:[#allocation6 + $0x38] sm:$0xff]  ;;  %v437_v15 = vld [vmem:[#allocation8 + $0x28] sm:$0xff]  ;;  %s2432_s12 = sshll.u32 %s337_s11, 4  ;;  %s3835_s8 = scalar_lea.hbm %s3886_s6, %s2600_s14  ;;  %s3837_s12 = int_to_ptr.vmem [resolvable:$true] %s2432_s12 }
  0xb9   : > { %v2803_v13 = vpack.c.bf16 %v434_v11, %v432_v10  ;;  %v439_v16 = vld [vmem:[#allocation8 + $0x38] sm:$0xff]  ;;  %2802 = vmatprep.subr.bf16.mxu1 %v2801_v8  ;;  %v2789_v17 = vpack.c.bf16 %v346_v14, %v344_v12  ;;  %v343_v19 = vld [vmem:[#allocation6 + $0x20] sm:$0xff]  ;;  %v345_v20 = vld [vmem:[#allocation6 + $0x30] sm:$0xff]  ;;  %s2419_s26 = scalar_lea.sflag [#allocation5], %s3627_s15  ;;  %s3261_s27 = scalar_lea.vmem %s3837_s12, 128 }
  0xba   : > { %2788 = vmatpush1.bf16.msra.mxu0 %v2787_v9  ;;  %v2805_v18 = vpack.c.bf16 %v439_v16, %v437_v15  ;;  %v436_v21 = vld [vmem:[#allocation8 + $0x20] sm:$0xff]  ;;  %v2791_v22 = vpack.c.bf16 %v345_v20, %v343_v19  ;;  %v438_v23 = vld [vmem:[#allocation8 + $0x30] sm:$0xff]  ;;  %v348_v24 = vld [vmem:[#allocation6 + $0x48] sm:$0xff]  ;;  %p3262_p7 = scmp.ne.s32.totalorder %s3837_s12, %s3261_s27  ;;  %p3905_p4 = scmp.ne.s32.totalorder %s3895_s16, 0 }
  0xbb   : > { %2804 = vmatpush1.bf16.msra.mxu1 %v2803_v13  ;;  %v350_v25 = vld [vmem:[#allocation6 + $0x58] sm:$0xff]  ;;  %2790 = vmatprep.subr.bf16.mxu0 %v2789_v17  ;;  %v2807_v26 = vpack.c.bf16 %v438_v23, %v436_v21  ;;  %v441_v28 = vld [vmem:[#allocation8 + $0x48] sm:$0xff]  ;;  %v347_v30 = vld [vmem:[#allocation6 + $0x40] sm:$0xff]  ;;  %s3354_s10 = smov [#allocation14]  }
  0xbc   : > { %2806 = vmatprep.subr.bf16.mxu1 %v2805_v18  ;;  %v2793_v27 = vpack.c.bf16 %v350_v25, %v348_v24  ;;  %v443_v29 = vld [vmem:[#allocation8 + $0x58] sm:$0xff]  ;;  %v349_v32 = vld [vmem:[#allocation6 + $0x50] sm:$0xff]  ;;  %v440_v33 = vld [vmem:[#allocation8 + $0x40] sm:$0xff]  ;;  %p3263_p12 = pnand %p3262_p7, %p3905_p4  ;;  %s3265_s17 = sshll.u32 %s3354_s10, 4  ;;  %s3266_s17 = int_to_ptr.vmem [resolvable:$false] %s3265_s17 }
  0xbd   : > { %v2809_v31 = vpack.c.bf16 %v443_v29, %v441_v28  ;;  %v442_v34 = vld [vmem:[#allocation8 + $0x50] sm:$0xff]  ;;  %v2795_v35 = vpack.c.bf16 %v349_v32, %v347_v30  ;;  %v352_v36 = vld [vmem:[#allocation6 + $0x68] sm:$0xff]  ;;  %v354_v37 = vld [vmem:[#allocation6 + $0x78] sm:$0xff]  ;;  %s3267_s20 = scalar_lea.vmem %s3266_s17, 256  ;;  %p3268_p13 = scmp.lt.s32.totalorder %s3837_s12, %s3266_s17 }
  0xbe   : > { %2792 = vmatpush1.bf16.msra.mxu0 %v2791_v22  ;;  %v445_v38 = vld [vmem:[#allocation8 + $0x68] sm:$0xff]  ;;  %v2811_v39 = vpack.c.bf16 %v442_v34, %v440_v33  ;;  %v2797_v40 = vpack.c.bf16 %v354_v37, %v352_v36  ;;  %v447_v41 = vld [vmem:[#allocation8 + $0x78] sm:$0xff]  ;;  %v351_v42 = vld [vmem:[#allocation6 + $0x60] sm:$0xff]  ;;  %p3264_p1 = pneg %p3263_p12  ;;  %p3269_p0 = scmp.lt.s32.totalorder %s3267_s20, %s3261_s27 }
  0xbf   : > { %2808 = vmatpush1.bf16.msra.mxu1 %v2807_v26  ;;  %2794 = vmatprep.subr.bf16.mxu0 %v2793_v27  ;;  %v353_v43 = vld [vmem:[#allocation6 + $0x70] sm:$0xff]  ;;  %v2813_v44 = vpack.c.bf16 %v447_v41, %v445_v38  ;;  %v444_v45 = vld [vmem:[#allocation8 + $0x60] sm:$0xff]  ;;  %v520_v47 = vld [vmem:[#allocation9 + $0x8] sm:$0xff] }
  0xc0   : > { %2810 = vmatprep.subr.bf16.mxu1 %v2809_v31  ;;  %v446_v46 = vld [vmem:[#allocation8 + $0x70] sm:$0xff]  ;;  %v522_v48 = vld [vmem:[#allocation9 + $0x18] sm:$0xff]  ;;  %v2799_v49 = vpack.c.bf16 %v353_v43, %v351_v42  ;;  %v519_v52 = vld [vmem:[#allocation9] sm:$0xff]  ;;  %p3270_p2 = por %p3269_p0, %p3268_p13 }
  0xc1   : > { %v2815_v50 = vpack.c.bf16 %v446_v46, %v444_v45  ;;  %v2817_v51 = vpack.c.bf16 %v522_v48, %v520_v47  ;;  %v521_v53 = vld [vmem:[#allocation9 + $0x10] sm:$0xff]  ;;  %v524_v54 = vld [vmem:[#allocation9 + $0x28] sm:$0xff]  ;;  %v526_v55 = vld [vmem:[#allocation9 + $0x38] sm:$0xff] }
  0xc2   : > { %2796 = vmatpush1.bf16.msra.mxu0 %v2795_v35  ;;  %v3654_v56 = vld [vmem:[%s3633_s29] sm:$0xff]  ;;  %v2819_v57 = vpack.c.bf16 %v521_v53, %v519_v52  ;;  %v2821_v58 = vpack.c.bf16 %v526_v55, %v524_v54  ;;  %v523_v59 = vld [vmem:[#allocation9 + $0x20] sm:$0xff]  ;;  %v528_v61 = vld [vmem:[#allocation9 + $0x48] sm:$0xff]  ;;  %p3271_p3 = pnand %p3270_p2, %p3264_p1 }
  0xc3   : > { %2812 = vmatpush1.bf16.msra.mxu1 %v2811_v39  ;;  %2798 = vmatprep.subr.bf16.mxu0 %v2797_v40  ;;  %v525_v60 = vld [vmem:[#allocation9 + $0x30] sm:$0xff]  ;;  %v530_v62 = vld [vmem:[#allocation9 + $0x58] sm:$0xff]  ;;  %v527_v2 = vld [vmem:[#allocation9 + $0x40] sm:$0xff] }
  0xc4   : > { %2814 = vmatprep.subr.bf16.mxu1 %v2813_v44  ;;  %v2823_v63 = vpack.c.bf16 %v525_v60, %v523_v59  ;;  %v2825_v1 = vpack.c.bf16 %v530_v62, %v528_v61  ;;  %v529_v3 = vld [vmem:[#allocation9 + $0x50] sm:$0xff]  ;;  %v532_v4 = vld [vmem:[#allocation9 + $0x68] sm:$0xff]  ;;  %v534_v5 = vld [vmem:[#allocation9 + $0x78] sm:$0xff] }
  0xc5   : > { %v2827_v6 = vpack.c.bf16 %v529_v3, %v527_v2  ;;  %v2829_v7 = vpack.c.bf16 %v534_v5, %v532_v4  ;;  %v531_v8 = vld [vmem:[#allocation9 + $0x60] sm:$0xff]  ;;  %v533_v9 = vld [vmem:[#allocation9 + $0x70] sm:$0xff]  ;;  %v1273_v41 = vld [vmem:[#allocation6 + $0x88] sm:$0xff] }
  0xc6   : > { %2800 = vmatpush1.bf16.msra.mxu0 %v2799_v49  ;;  %v2831_v10 = vpack.c.bf16 %v533_v9, %v531_v8  ;;  %v1275_v42 = vld [vmem:[#allocation6 + $0x98] sm:$0xff]  ;;  %v1272_v44 = vld [vmem:[#allocation6 + $0x80] sm:$0xff]  ;;  %v1274_v45 = vld [vmem:[#allocation6 + $0x90] sm:$0xff] }
  0xc7   : > { %2816 = vmatpush1.bf16.msra.mxu1 %v2815_v50  ;;  %2818 = vmatprep.subr.bf16.mxu0 %v2817_v51  ;;  %v2833_v43 = vpack.c.bf16 %v1275_v42, %v1273_v41  ;;  %v2835_v46 = vpack.c.bf16 %v1274_v45, %v1272_v44  ;;  %v1277_v47 = vld [vmem:[#allocation6 + $0xa8] sm:$0xff]  ;;  %v1279_v48 = vld [vmem:[#allocation6 + $0xb8] sm:$0xff]  ;;  %v1276_v50 = vld [vmem:[#allocation6 + $0xa0] sm:$0xff] }
  0xc8   : > { %2705 = vmatprep.subr.mxu1 %v3351_v0  ;;  %v2837_v49 = vpack.c.bf16 %v1279_v48, %v1277_v47  ;;  %v1278_v51 = vld [vmem:[#allocation6 + $0xb0] sm:$0xff]  ;;  %v1281_v53 = vld [vmem:[#allocation6 + $0xc8] sm:$0xff]  ;;  %v1283_v54 = vld [vmem:[#allocation6 + $0xd8] sm:$0xff] }
  0xc9   : > { %2568 = vmatmul.mubr.msk.f32.vlgmr.msra.gmra.mrb[0].mxu0 %vm355_vm0, %v3654_v56  ;;  %v2839_v52 = vpack.c.bf16 %v1278_v51, %v1276_v50  ;;  %v2841_v55 = vpack.c.bf16 %v1283_v54, %v1281_v53  ;;  %v1285_v60 = vld [vmem:[#allocation6 + $0xe8] sm:$0xff]  ;;  %v1287_v61 = vld [vmem:[#allocation6 + $0xf8] sm:$0xff]  ;;  %v1376_v41 = vld [vmem:[#allocation8 + $0xf0] sm:$0xff] }
  0xca   : > { %2569 = vmatmul.mubr.msk.f32.vlgmr.msra.gmra.mrb[0].mxu1 %vm355_vm0, %v3654_v56  ;;  %2820 = vmatpush1.bf16.msra.mxu0 %v2819_v57  ;;  %v1280_v57 = vld [vmem:[#allocation6 + $0xc0] sm:$0xff]  ;;  %v2845_v62 = vpack.c.bf16 %v1287_v61, %v1285_v60  ;;  %v1453_v44 = vld [vmem:[#allocation9 + $0x98] sm:$0xff]  ;;  %v1452_v47 = vld [vmem:[#allocation9 + $0x90] sm:$0xff] }
  0xcb   : > { %2822 = vmatprep.subr.bf16.mxu0 %v2821_v58  ;;  %599 = vmatprep.mubr.f32.mxu0 %v3351_v0  ;;  %v1282_v58 = vld [vmem:[#allocation6 + $0xd0] sm:$0xff]  ;;  %v1457_v50 = vld [vmem:[#allocation9 + $0xb8] sm:$0xff]  ;;  %v1463_v61 = vld [vmem:[#allocation9 + $0xe8] sm:$0xff] }
  0xcc   : > { %2707 = vmatprep.mubr.msk.f32.mxu1 %vm3352_vm1, %v3351_v0  ;;  %v2843_v59 = vpack.c.bf16 %v1282_v58, %v1280_v57  ;;  %v1456_v53 = vld [vmem:[#allocation9 + $0xb0] sm:$0xff]  ;;  %v1461_v57 = vld [vmem:[#allocation9 + $0xd8] sm:$0xff]  ;;  %v1458_v58 = vld [vmem:[#allocation9 + $0xc0] sm:$0xff] }
  0xcd   : > { %v1460_v60 = vld [vmem:[#allocation9 + $0xd0] sm:$0xff] }
  0xce   : > { %2824 = vmatpush1.bf16.msra.mxu0 %v2823_v63  ;;  %v1284_v63 = vld [vmem:[#allocation6 + $0xe0] sm:$0xff] }
  0xcf   : > { %2826 = vmatprep.subr.bf16.mxu0 %v2825_v1  ;;  %v1286_v1 = vld [vmem:[#allocation6 + $0xf0] sm:$0xff] }
  0xd0   : > { %v2847_v2 = vpack.c.bf16 %v1286_v1, %v1284_v63  ;;  %v2875_v63 = vpack.c.bf16 %v1460_v60, %v1458_v58  ;;  %v2222_v58 = vld [vmem:[#allocation11 + $0x80] sm:$0xff] }
  0xd1   : > { %v2206_v60 = vld [vmem:[#allocation11] sm:$0xff] }
  0xd2   : > { %2828 = vmatpush1.bf16.msra.mxu0 %v2827_v6 }
  0xd3   : > { %2830 = vmatprep.subr.bf16.mxu0 %v2829_v7 }
  0xd6   : > { %2832 = vmatpush1.bf16.msra.mxu0 %v2831_v10 }
  0xd7   : > { %2725 = vmatprep.subr.mxu0 %v3351_v0 }
  0xd9   : > { %2570 = vmatmul.mubr.msk.f32.vlgmr.msra.gmra.mrb[2].mxu0 %vm355_vm0, %v3654_v56 }
  0xda   : > { %2727 = vmatprep.mubr.msk.f32.mxu0 %vm3352_vm1, %v3351_v0 }
 0x19c   : > { %v425_v11 = vpop.f32.mrb[0].mxu0 }
 0x19d   : > { %v430_v12 = vmul.f32 0.125, %v425_v11  ;;  %v514_v13 = vpop.f32.mrb[0].mxu1  ;;  %v427_v14 = vpop.f32.mrb[1].mxu0 }
 0x19e   : > { %v431_v15 = vmul.f32 0.125, %v427_v14  ;;  %v516_v16 = vpop.f32.mrb[1].mxu1  ;;  %2706 = vmatpush3.xpose.msk.msra.mxu1 %vm355_vm0, %v514_v13  ;;  %v1363_v14 = vld [vmem:[#allocation8 + $0x88] sm:$0xff] }
 0x19f   : > { %2726 = vmatpush3.xpose.msk.msra.mxu0 %vm355_vm0, %v516_v16  ;;  %767 = vrot.lane.b32.xlu1 %v430_v12, %s3353_s28 }
 0x1a0   : > { %2735 = vmatprep.subr.mxu0 %v3351_v0  ;;  %2710 = vmatprep.subr.mxu1 %v3351_v0 }
 0x1a1   : > { %2708 = vmatmul.mubr.msk.f32.vlgmr.msra.gmra.mrb[2].mxu1 %vm355_vm0, %v430_v12 }
 0x1a2   : > { %2728 = vmatmul.mubr.msk.f32.vlgmr.msra.gmra.mrb[4].mxu0 %vm355_vm0, %v431_v15  ;;  %2712 = vmatprep.mubr.msk.f32.mxu1 %vm3352_vm1, %v3351_v0 }
 0x1a3   : > { %1095 = vrot.lane.b32.xlu1 %v516_v16, %s3353_s28  ;;  %2737 = vmatprep.mubr.msk.f32.mxu0 %vm3352_vm1, %v3351_v0 }
 0x1a7   : > { %1093 = vrot.lane.b32.xlu1 %v431_v15, %s3353_s28  ;;  %v1365_v15 = vld [vmem:[#allocation8 + $0x98] sm:$0xff] }
 0x1a8   : > { %v2849_v16 = vpack.c.bf16 %v1365_v15, %v1363_v14 }
 0x1ac   : > { %v601_v17 = vpop.f32.mrb[2].mxu0 }
 0x1ad   : > { %v3682_v18 = vpop.f32.mrb[3].mxu0  ;;  %2711 = vmatpush3.msra.mxu1 %v601_v17 }
 0x1ae   : > { %2715 = vmatprep.subr.mxu1 %v3351_v0 }
 0x211   : > { %v768_v19 = vpop.permute.xlu1 %767 }
 0x215   : > { %v1096_v20 = vpop.permute.xlu1 %1095 }
 0x216   : > { %2736 = vmatpush3.xpose.msk.msra.mxu0 %vm355_vm0, %v1096_v20 }
 0x217   : > { %2834 = vmatprep.subr.bf16.mxu0 %v2833_v43  ;;  %v1451_v43 = vld [vmem:[#allocation9 + $0x88] sm:$0xff] }
 0x218   : > { %v2865_v45 = vpack.c.bf16 %v1453_v44, %v1451_v43 }
 0x219   : > { %v1094_v21 = vpop.permute.xlu1 %1093 }
 0x21a   : > { %2738 = vmatmul.mubr.msk.f32.vlgmr.msra.gmra.mrb[6].mxu0 %vm355_vm0, %v1094_v21  ;;  %v1367_v21 = vld [vmem:[#allocation8 + $0xa8] sm:$0xff] }
 0x21b   : > { %1352 = vmatprep.mubr.f32.mxu0 %v3351_v0  ;;  %2836 = vmatpush1.bf16.msra.mxu0 %v2835_v46  ;;  %v1450_v46 = vld [vmem:[#allocation9 + $0x80] sm:$0xff] }
 0x21c   : > { %2838 = vmatprep.subr.bf16.mxu0 %v2837_v49  ;;  %v2867_v48 = vpack.c.bf16 %v1452_v47, %v1450_v46  ;;  %v1455_v49 = vld [vmem:[#allocation9 + $0xa8] sm:$0xff] }
 0x21d   : > { %v2869_v51 = vpack.c.bf16 %v1457_v50, %v1455_v49 }
 0x21f   : > { %2840 = vmatpush1.bf16.msra.mxu0 %v2839_v52  ;;  %v1454_v52 = vld [vmem:[#allocation9 + $0xa0] sm:$0xff] }
 0x220   : > { %2842 = vmatprep.subr.bf16.mxu0 %v2841_v55  ;;  %v2871_v54 = vpack.c.bf16 %v1456_v53, %v1454_v52  ;;  %v1459_v55 = vld [vmem:[#allocation9 + $0xc8] sm:$0xff] }
 0x223   : > { %2844 = vmatpush1.bf16.msra.mxu0 %v2843_v59  ;;  %v2873_v59 = vpack.c.bf16 %v1461_v57, %v1459_v55 }
 0x224   : > { %2846 = vmatprep.subr.bf16.mxu0 %v2845_v62  ;;  %v1465_v62 = vld [vmem:[#allocation9 + $0xf8] sm:$0xff] }
 0x225   : > { %v2877_v1 = vpack.c.bf16 %v1465_v62, %v1463_v61  ;;  %v2207_v62 = vld [vmem:[#allocation11 + $0x8] sm:$0xff] }
 0x227   : > { %2848 = vmatpush1.bf16.msra.mxu0 %v2847_v2  ;;  %v1462_v2 = vld [vmem:[#allocation9 + $0xe0] sm:$0xff] }
 0x228   : > { %2866 = vmatprep.subr.bf16.mxu0 %v2865_v45 }
 0x22a   : > { %2583 = vmatmul.mubr.msk.f32.vlgmr.msra.gmra.mrb[8].mxu0 %vm355_vm0, %v3654_v56 }
 0x22b   : > { %1530 = vmatprep.mubr.f32.mxu0 %v3351_v0  ;;  %2868 = vmatpush1.bf16.msra.mxu0 %v2867_v48 }
 0x22c   : > { %2870 = vmatprep.subr.bf16.mxu0 %v2869_v51 }
 0x22f   : > { %2872 = vmatpush1.bf16.msra.mxu0 %v2871_v54 }
 0x230   : > { %2874 = vmatprep.subr.bf16.mxu0 %v2873_v59  ;;  %v2223_v59 = vld [vmem:[#allocation11 + $0x88] sm:$0xff] }
 0x231   : > { %v2881_v61 = vpack.c.bf16 %v2223_v59, %v2222_v58 }
 0x233   : > { %2876 = vmatpush1.bf16.msra.mxu0 %v2875_v63  ;;  %v2883_v63 = vpack.c.bf16 %v2207_v62, %v2206_v60 }
 0x234   : > { %2878 = vmatprep.subr.bf16.mxu0 %v2877_v1 }
 0x274   : > { %v678_v22 = vpop.f32.mrb[2].mxu1 }
 0x275   : > { %v2709_v23 = vpop.f32.mrb[3].mxu1  ;;  %v3688_v24 = vpop.f32.mrb[4].mxu0  ;;  %v683_v25 = vsel %vm682_vm2, %v678_v22, -inf }
 0x276   : > { %684 = vmax.xlane.f32.xlu0 %v683_v25  ;;  %v2729_v26 = vpop.f32.mrb[5].mxu0  ;;  %v1009_v27 = vsel %vm682_vm2, %v3688_v24, -inf  ;;  %v1366_v25 = vld [vmem:[#allocation8 + $0xa0] sm:$0xff] }
 0x277   : > { %v1368_v26 = vld [vmem:[#allocation8 + $0xb0] sm:$0xff] }
 0x28c   : > { %769 = vrot.lane.b32.xlu0 %v514_v13, %s3353_s28 }
 0x2ab   : > { %1010 = vmax.xlane.f32.xlu0 %v1009_v27 }
 0x2c1   : > { %1181 = vrot.lane.b32.xlu0 %v3682_v18, %s3353_s28 }
 0x2ed   : > { %v3696_v28 = vpop.f32.mrb[6].mxu0 }
 0x2ee   : > { %v2739_v29 = vpop.f32.mrb[7].mxu0  ;;  %v1171_v30 = vsel %vm682_vm2, %v3696_v28, -inf }
 0x2ef   : > { %1172 = vmax.xlane.f32.xlu1 %v1171_v30  ;;  %v1373_v29 = vld [vmem:[#allocation8 + $0xd8] sm:$0xff]  ;;  %v2855_v30 = vpack.c.bf16 %v1368_v26, %v1366_v25 }
 0x303   : > { %v685_v31 = vpop.xlane.xlu0 %684 }
 0x304   : > { %v686_v32 = vsub.f32 %v678_v22, %v685_v31  ;;  %v1369_v22 = vld [vmem:[#allocation8 + $0xb8] sm:$0xff] }
 0x306   : > { %v687_v33 = vmul.f32 1.442695, %v686_v32  ;;  %v1370_v32 = vld [vmem:[#allocation8 + $0xc0] sm:$0xff] }
 0x307   : > { %v770_v35 = vpop.permute.xlu0 %769 }
 0x308   : > { %3059 = vpow2.f32 %v687_v33  ;;  %v1372_v33 = vld [vmem:[#allocation8 + $0xd0] sm:$0xff] }
 0x312   : > { %v3700_v34 = vpop.eup %3059 }
 0x313   : > { %2713 = vmatmul.mubr.msk.f32.vlgmr.msra.gmra.mrb[4].mxu1 %vm682_vm2, %v3700_v34 }
 0x314   : > { %2716 = vmatpush3.xpose.msk.msra.mxu1 %vm355_vm0, %v770_v35  ;;  %2717 = vmatprep.mubr.msk.f32.mxu1 %vm3352_vm1, %v3351_v0  ;;  %v1375_v35 = vld [vmem:[#allocation8 + $0xe8] sm:$0xff] }
 0x315   : > { %2720 = vmatprep.subr.mxu1 %v3351_v0 }
 0x317   : > { %2718 = vmatmul.mubr.msk.f32.vlgmr.msra.gmra.mrb[6].mxu1 %vm355_vm0, %v768_v19  ;;  %v1364_v19 = vld [vmem:[#allocation8 + $0x90] sm:$0xff] }
 0x318   : > { %2722 = vmatprep.mubr.msk.f32.mxu1 %vm3352_vm1, %v3351_v0 }
 0x338   : > { %v1011_v4 = vpop.xlane.xlu0 %1010 }
 0x339   : > { %v1012_v6 = vsub.f32 %v3688_v24, %v1011_v4  ;;  %v2853_v24 = vpack.c.bf16 %v1369_v22, %v1367_v21 }
 0x33b   : > { %v1013_v10 = vmul.f32 1.442695, %v1012_v6 }
 0x33c   : > { %v1182_v23 = vpop.permute.xlu0 %1181 }
 0x37c   : > { %v1173_v3 = vpop.xlane.xlu1 %1172 }
 0x37d   : > { %v1174_v11 = vsub.f32 %v3696_v28, %v1173_v3  ;;  %v1371_v28 = vld [vmem:[#allocation8 + $0xc8] sm:$0xff]  ;;  %v1464_v3 = vld [vmem:[#allocation9 + $0xf0] sm:$0xff] }
 0x37e   : > { %v2857_v31 = vpack.c.bf16 %v1373_v29, %v1371_v28  ;;  %v2879_v4 = vpack.c.bf16 %v1464_v3, %v1462_v2 }
 0x37f   : > { %v1175_v12 = vmul.f32 1.442695, %v1174_v11 }
 0x380   : > { %2880 = vmatpush1.bf16.msra.mxu0 %v2879_v4 }
 0x381   : > { %2765 = vmatprep.subr.mxu0 %v3351_v0 }
 0x383   : > { %2585 = vmatmul.mubr.msk.f32.vlgmr.msra.gmra.mrb[10].mxu0 %vm355_vm0, %v3654_v56 }
 0x384   : > { %2767 = vmatprep.mubr.msk.f32.mxu0 %vm3352_vm1, %v3351_v0 }
 0x3e6   : > { %v3711_v36 = vpop.f32.mrb[4].mxu1 }
 0x3e7   : > { %v2714_v37 = vpop.f32.mrb[5].mxu1 }
 0x3e8   : > { %v1377_v37 = vld [vmem:[#allocation8 + $0xf8] sm:$0xff] }
 0x3ea   : > { %v841_v38 = vpop.f32.mrb[6].mxu1 }
 0x3eb   : > { %v2719_v39 = vpop.f32.mrb[7].mxu1  ;;  %v845_v40 = vsel %vm682_vm2, %v841_v38, -inf }
 0x3ec   : > { %846 = vmax.xlane.f32.xlu1 %v845_v40  ;;  %v2861_v39 = vpack.c.bf16 %v1377_v37, %v1375_v35  ;;  %v1374_v40 = vld [vmem:[#allocation8 + $0xe0] sm:$0xff] }
 0x3ed   : > { %v2863_v42 = vpack.c.bf16 %v1376_v41, %v1374_v40 }
 0x3fd   : > { %855 = vrot.lane.b32.xlu1 %v601_v17, %s3353_s28  ;;  %v1362_v17 = vld [vmem:[#allocation8 + $0x80] sm:$0xff] }
 0x479   : > { %v847_v5 = vpop.xlane.xlu1 %846 }
 0x47a   : > { %v848_v7 = vsub.f32 %v841_v38, %v847_v5  ;;  %v2859_v38 = vpack.c.bf16 %v1372_v33, %v1370_v32  ;;  %v1354_v5 = vpop.f32.mrb[8].mxu0 }
 0x47b   : > { %v1356_v6 = vpop.f32.mrb[9].mxu0  ;;  %v1359_v15 = vmul.f32 0.125, %v1354_v5 }
 0x47c   : > { %v849_v8 = vmul.f32 1.442695, %v848_v7 }
 0x47d   : > { %v856_v9 = vpop.permute.xlu1 %855 }
 0x47e   : > { %3061 = vpow2.f32 %v849_v8  ;;  %2721 = vmatpush3.msra.mxu1 %v856_v9 }
 0x47f   : > { %2730 = vmatprep.subr.mxu1 %v3351_v0  ;;  %3063 = vpow2.f32 %v1013_v10 }
 0x480   : > { %3065 = vpow2.f32 %v1175_v12 }
 0x488   : > { %v3721_v13 = vpop.eup %3061 }
 0x489   : > { %2723 = vmatmul.mubr.msk.f32.vlgmr.msra.gmra.mrb[8].mxu1 %vm682_vm2, %v3721_v13  ;;  %v3729_v20 = vpop.eup %3063  ;;  %v851_v54 = vsel %vm682_vm2, %v3721_v13, 0.0 }
 0x48a   : > { %2731 = vmatpush3.msra.mxu1 %v3682_v18  ;;  %2732 = vmatprep.mubr.msk.f32.mxu1 %vm3352_vm1, %v3351_v0  ;;  %v2851_v18 = vpack.c.bf16 %v1364_v19, %v1362_v17  ;;  %v3735_v27 = vpop.eup %3065  ;;  %v1532_v17 = vpop.f32.mrb[10].mxu0 }
 0x48b   : > { %2740 = vmatprep.subr.mxu1 %v3351_v0  ;;  %v3770_v19 = vpop.f32.mrb[11].mxu0  ;;  %v1177_v40 = vsel %vm682_vm2, %v3735_v27, 0.0 }
 0x48d   : > { %2733 = vmatmul.mubr.msk.f32.vlgmr.msra.gmra.mrb[10].mxu1 %vm682_vm2, %v3729_v20 }
 0x48e   : > { %2741 = vmatpush3.msra.mxu1 %v1182_v23  ;;  %2742 = vmatprep.mubr.msk.f32.mxu1 %vm3352_vm1, %v3351_v0 }
 0x48f   : > { %2850 = vmatprep.subr.bf16.mxu1 %v2849_v16 }
 0x491   : > { %2743 = vmatmul.mubr.msk.f32.vlgmr.msra.gmra.mrb[12].mxu1 %vm682_vm2, %v3735_v27 }
 0x492   : > { %2852 = vmatpush1.bf16.msra.mxu1 %v2851_v18  ;;  %1442 = vmatprep.mubr.f32.mxu1 %v3351_v0 }
 0x493   : > { %2854 = vmatprep.subr.bf16.mxu1 %v2853_v24 }
 0x496   : > { %2856 = vmatpush1.bf16.msra.mxu1 %v2855_v30 }
 0x497   : > { %2858 = vmatprep.subr.bf16.mxu1 %v2857_v31 }
 0x49a   : > { %2860 = vmatpush1.bf16.msra.mxu1 %v2859_v38 }
 0x49b   : > { %2862 = vmatprep.subr.bf16.mxu1 %v2861_v39 }
 0x49e   : > { %2864 = vmatpush1.bf16.msra.mxu1 %v2863_v42 }
 0x49f   : > { %2745 = vmatprep.subr.mxu1 %v3351_v0 }
 0x4a1   : > { %2584 = vmatmul.mubr.msk.f32.vlgmr.msra.gmra.mrb[14].mxu1 %vm355_vm0, %v3654_v56  ;;  %v1360_v56 = vmul.f32 0.125, %v1356_v6  ;;  %v1015_v6 = vsel %vm682_vm2, %v3729_v20, 0.0  ;;  %v2209_v20 = vld [vmem:[#allocation11 + $0x18] sm:$0xff] }
 0x4a2   : > { %2747 = vmatprep.mubr.msk.f32.mxu1 %vm3352_vm1, %v3351_v0 }
 0x55c   : > { %v3750_v7 = vpop.f32.mrb[8].mxu1 }
 0x55d   : > { %v2724_v8 = vpop.f32.mrb[9].mxu1 }
 0x55e   : > { %v689_v8 = vsel %vm682_vm2, %v3700_v34, 0.0  ;;  %v2228_v34 = vld [vmem:[#allocation11 + $0xb0] sm:$0xff] }
 0x560   : > { %v3752_v9 = vpop.f32.mrb[10].mxu1 }
 0x561   : > { %v2734_v10 = vpop.f32.mrb[11].mxu1 }
 0x564   : > { %v3754_v11 = vpop.f32.mrb[12].mxu1 }
 0x565   : > { %v2744_v12 = vpop.f32.mrb[13].mxu1 }
 0x566   : > { %v2224_v12 = vld [vmem:[#allocation11 + $0x90] sm:$0xff] }
 0x574   : > { %v1444_v14 = vpop.f32.mrb[14].mxu1 }
 0x575   : > { %1699 = vrot.lane.b32.xlu0 %v1444_v14, %s3353_s28  ;;  %v1446_v16 = vpop.f32.mrb[15].mxu1  ;;  %2746 = vmatpush3.xpose.msk.msra.mxu1 %vm355_vm0, %v1444_v14  ;;  %v2225_v14 = vld [vmem:[#allocation11 + $0x98] sm:$0xff] }
 0x576   : > { %2766 = vmatpush3.xpose.msk.msra.mxu0 %vm355_vm0, %v1446_v16  ;;  %2750 = vmatprep.subr.mxu1 %v3351_v0 }
 0x577   : > { %2775 = vmatprep.subr.mxu0 %v3351_v0 }
 0x578   : > { %2748 = vmatmul.mubr.msk.f32.vlgmr.msra.gmra.mrb[16].mxu1 %vm355_vm0, %v1359_v15 }
 0x579   : > { %1697 = vrot.lane.b32.xlu0 %v1359_v15, %s3353_s28  ;;  %2768 = vmatmul.mubr.msk.f32.vlgmr.msra.gmra.mrb[12].mxu0 %vm355_vm0, %v1360_v56  ;;  %v2885_v15 = vpack.c.bf16 %v2225_v14, %v2224_v12  ;;  %v2241_v12 = vld [vmem:[#allocation11 + $0x118] sm:$0xff]  ;;  %v2258_v14 = vld [vmem:[#allocation11 + $0x1a0] sm:$0xff] }
 0x57a   : > { %2777 = vmatprep.mubr.msk.f32.mxu0 %vm3352_vm1, %v3351_v0  ;;  %2752 = vmatprep.mubr.msk.f32.mxu1 %vm3352_vm1, %v3351_v0 }
 0x57b   : > { %2751 = vmatpush3.msra.mxu1 %v1532_v17 }
 0x57c   : > { %2755 = vmatprep.subr.mxu1 %v3351_v0 }
 0x57d   : > { %2025 = vrot.lane.b32.xlu0 %v1446_v16, %s3353_s28  ;;  %v2208_v16 = vld [vmem:[#allocation11 + $0x10] sm:$0xff] }
 0x581   : > { %2023 = vrot.lane.b32.xlu0 %v1360_v56, %s3353_s28  ;;  %v2887_v56 = vpack.c.bf16 %v2209_v20, %v2208_v16  ;;  %v2242_v16 = vld [vmem:[#allocation11 + $0x120] sm:$0xff]  ;;  %v2243_v20 = vld [vmem:[#allocation11 + $0x128] sm:$0xff] }
 0x5e7   : > { %v1700_v21 = vpop.permute.xlu0 %1699 }
 0x5eb   : > { %v1698_v22 = vpop.permute.xlu0 %1697 }
 0x5ef   : > { %v2026_v23 = vpop.permute.xlu0 %2025 }
 0x5f0   : > { %2776 = vmatpush3.xpose.msk.msra.mxu0 %vm355_vm0, %v2026_v23 }
 0x5f1   : > { %2882 = vmatprep.subr.bf16.mxu0 %v2881_v61 }
 0x5f3   : > { %v2024_v18 = vpop.permute.xlu0 %2023 }
 0x5f4   : > { %2778 = vmatmul.mubr.msk.f32.vlgmr.msra.gmra.mrb[14].mxu0 %vm355_vm0, %v2024_v18  ;;  %v2229_v18 = vld [vmem:[#allocation11 + $0xb8] sm:$0xff] }
 0x5f5   : > { %2884 = vmatpush3.bf16.msra.mxu0 %v2883_v63  ;;  %v2254_v63 = vld [vmem:[#allocation11 + $0x180] sm:$0xff] }
 0x5f6   : > { %2886 = vmatprep.subr.bf16.mxu0 %v2885_v15  ;;  %v2259_v15 = vld [vmem:[#allocation11 + $0x1a8] sm:$0xff] }
 0x5f9   : > { %2888 = vmatpush3.bf16.msra.mxu0 %v2887_v56  ;;  %v2260_v56 = vld [vmem:[#allocation11 + $0x1b0] sm:$0xff] }
 0x64b   : > { %v1609_v24 = vpop.f32.mrb[16].mxu1 }
 0x64c   : > { %v2749_v25 = vpop.f32.mrb[17].mxu1  ;;  %v1935_v26 = vpop.f32.mrb[12].mxu0  ;;  %v1613_v28 = vsel %vm682_vm2, %v1609_v24, -inf }
 0x64d   : > { %1614 = vmax.xlane.f32.xlu1 %v1613_v28  ;;  %v2769_v29 = vpop.f32.mrb[13].mxu0  ;;  %v1939_v30 = vsel %vm682_vm2, %v1935_v26, -inf  ;;  %v2212_v25 = vld [vmem:[#allocation11 + $0x30] sm:$0xff] }
 0x64e   : > { %v2230_v29 = vld [vmem:[#allocation11 + $0xc0] sm:$0xff] }
 0x651   : > { %1940 = vmax.xlane.f32.xlu1 %v1939_v30  ;;  %v2231_v30 = vld [vmem:[#allocation11 + $0xc8] sm:$0xff] }
 0x6c7   : > { %v2097_v31 = vpop.f32.mrb[14].mxu0 }
 0x6c8   : > { %v2779_v32 = vpop.f32.mrb[15].mxu0  ;;  %v2101_v33 = vsel %vm682_vm2, %v2097_v31, -inf }
 0x6c9   : > { %2102 = vmax.xlane.f32.xlu1 %v2101_v33  ;;  %v2214_v32 = vld [vmem:[#allocation11 + $0x40] sm:$0xff]  ;;  %v2215_v33 = vld [vmem:[#allocation11 + $0x48] sm:$0xff] }
 0x6da   : > { %v1615_v35 = vpop.xlane.xlu1 %1614  ;;  %1785 = vrot.lane.b32.xlu1 %v1532_v17, %s3353_s28  ;;  %v2226_v17 = vld [vmem:[#allocation11 + $0xa0] sm:$0xff] }
 0x6db   : > { %v1616_v37 = vsub.f32 %v1609_v24, %v1615_v35  ;;  %v2893_v24 = vpack.c.bf16 %v2229_v18, %v2228_v34  ;;  %v2232_v35 = vld [vmem:[#allocation11 + $0xd0] sm:$0xff]  ;;  %v2263_v34 = vld [vmem:[#allocation11 + $0x1c8] sm:$0xff] }
 0x6dd   : > { %v1617_v38 = vmul.f32 1.442695, %v1616_v37  ;;  %v2899_v37 = vpack.c.bf16 %v2215_v33, %v2214_v32  ;;  %v2248_v32 = vld [vmem:[#allocation11 + $0x150] sm:$0xff]  ;;  %v2249_v33 = vld [vmem:[#allocation11 + $0x158] sm:$0xff] }
 0x6de   : > { %v1941_v41 = vpop.xlane.xlu1 %1940 }
 0x6df   : > { %3067 = vpow2.f32 %v1617_v38  ;;  %v1942_v52 = vsub.f32 %v1935_v26, %v1941_v41  ;;  %v2213_v26 = vld [vmem:[#allocation11 + $0x38] sm:$0xff] }
 0x6e0   : > { %v2895_v28 = vpack.c.bf16 %v2213_v26, %v2212_v25  ;;  %v2233_v38 = vld [vmem:[#allocation11 + $0xd8] sm:$0xff]  ;;  %v2246_v25 = vld [vmem:[#allocation11 + $0x140] sm:$0xff]  ;;  %v2247_v26 = vld [vmem:[#allocation11 + $0x148] sm:$0xff] }
 0x6e1   : > { %v1943_v53 = vmul.f32 1.442695, %v1942_v52  ;;  %v2901_v41 = vpack.c.bf16 %v2233_v38, %v2232_v35  ;;  %v2237_v52 = vld [vmem:[#allocation11 + $0xf8] sm:$0xff]  ;;  %v2266_v35 = vld [vmem:[#allocation11 + $0x1e0] sm:$0xff]  ;;  %v2935_v38 = vpack.c.bf16 %v2249_v33, %v2248_v32 }
 0x6e9   : > { %v3779_v39 = vpop.eup %3067 }
 0x6ea   : > { %2753 = vmatmul.mubr.msk.f32.vlgmr.msra.gmra.mrb[18].mxu1 %vm682_vm2, %v3779_v39  ;;  %v1619_v10 = vsel %vm682_vm2, %v3779_v39, 0.0  ;;  %v2216_v39 = vld [vmem:[#allocation11 + $0x50] sm:$0xff] }
 0x6eb   : > { %2756 = vmatpush3.xpose.msk.msra.mxu1 %vm355_vm0, %v1700_v21  ;;  %2757 = vmatprep.mubr.msk.f32.mxu1 %vm3352_vm1, %v3351_v0  ;;  %v2210_v21 = vld [vmem:[#allocation11 + $0x20] sm:$0xff] }
 0x6ec   : > { %2760 = vmatprep.subr.mxu1 %v3351_v0 }
 0x6ee   : > { %2758 = vmatmul.mubr.msk.f32.vlgmr.msra.gmra.mrb[20].mxu1 %vm355_vm0, %v1698_v22  ;;  %v2211_v22 = vld [vmem:[#allocation11 + $0x28] sm:$0xff] }
 0x6ef   : > { %2762 = vmatprep.mubr.msk.f32.mxu1 %vm3352_vm1, %v3351_v0  ;;  %v2891_v23 = vpack.c.bf16 %v2211_v22, %v2210_v21  ;;  %v2244_v21 = vld [vmem:[#allocation11 + $0x130] sm:$0xff]  ;;  %v2245_v22 = vld [vmem:[#allocation11 + $0x138] sm:$0xff] }
 0x6f0   : > { %v2927_v18 = vpack.c.bf16 %v2245_v22, %v2244_v21 }
 0x6fe   : > { %1178 = vadd.xlane.f32.xlu1 %v1177_v40  ;;  %v2217_v40 = vld [vmem:[#allocation11 + $0x58] sm:$0xff] }
 0x756   : > { %v2103_v42 = vpop.xlane.xlu1 %2102 }
 0x757   : > { %v2104_v43 = vsub.f32 %v2097_v31, %v2103_v42  ;;  %v2897_v31 = vpack.c.bf16 %v2231_v30, %v2230_v29  ;;  %v2234_v42 = vld [vmem:[#allocation11 + $0xe0] sm:$0xff]  ;;  %v2265_v29 = vld [vmem:[#allocation11 + $0x1d8] sm:$0xff]  ;;  %v2931_v30 = vpack.c.bf16 %v2247_v26, %v2246_v25 }
 0x759   : > { %v2105_v44 = vmul.f32 1.442695, %v2104_v43  ;;  %v2235_v43 = vld [vmem:[#allocation11 + $0xe8] sm:$0xff] }
 0x75a   : > { %v1786_v45 = vpop.permute.xlu1 %1785 }
 0x75b   : > { %3069 = vpow2.f32 %v2105_v44  ;;  %2761 = vmatpush3.msra.mxu1 %v1786_v45  ;;  %v2903_v44 = vpack.c.bf16 %v2217_v40, %v2216_v39  ;;  %v2905_v45 = vpack.c.bf16 %v2235_v43, %v2234_v42  ;;  %v2250_v40 = vld [vmem:[#allocation11 + $0x160] sm:$0xff] }
 0x75c   : > { %2770 = vmatprep.subr.mxu1 %v3351_v0  ;;  %3071 = vpow2.f32 %v1943_v53 }
 0x765   : > { %v3070_v46 = vpop.eup %3069 }
 0x766   : > { %v2107_v47 = vsel %vm682_vm2, %v3070_v46, 0.0  ;;  %v3072_v55 = vpop.eup %3071 }
 0x767   : > { %2108 = vadd.xlane.f32.xlu1 %v2107_v47  ;;  %v1945_v57 = vsel %vm682_vm2, %v3072_v55, 0.0  ;;  %v2219_v47 = vld [vmem:[#allocation11 + $0x68] sm:$0xff] }
 0x7bd   : > { %v3794_v48 = vpop.f32.mrb[18].mxu1 }
 0x7be   : > { %v2754_v49 = vpop.f32.mrb[19].mxu1 }
 0x7bf   : > { %v1179_v49 = vpop.xlane.xlu1 %1178 }
 0x7c1   : > { %v1771_v50 = vpop.f32.mrb[20].mxu1 }
 0x7c2   : > { %v2759_v51 = vpop.f32.mrb[21].mxu1  ;;  %v1775_v27 = vsel %vm682_vm2, %v1771_v50, -inf }
 0x7c3   : > { %1776 = vmax.xlane.f32.xlu0 %v1775_v27  ;;  %v2236_v27 = vld [vmem:[#allocation11 + $0xf0] sm:$0xff] }
 0x7c4   : > { %v2909_v53 = vpack.c.bf16 %v2237_v52, %v2236_v27 }
 0x7d9   : > { %2111 = vrot.lane.b32.xlu0 %v3770_v19, %s3353_s28 }
 0x7f4   : > { %v2109_v43 = vpop.xlane.xlu1 %2108 }
 0x7f8   : > { %852 = vadd.xlane.f32.xlu0 %v851_v54  ;;  %v2220_v54 = vld [vmem:[#allocation11 + $0x70] sm:$0xff] }
 0x7fc   : > { %1946 = vadd.xlane.f32.xlu0 %v1945_v57 }
 0x850   : > { %v1777_v1 = vpop.xlane.xlu0 %1776 }
 0x851   : > { %v1778_v2 = vsub.f32 %v1771_v50, %v1777_v1  ;;  %v2255_v1 = vld [vmem:[#allocation11 + $0x188] sm:$0xff] }
 0x853   : > { %v1779_v3 = vmul.f32 1.442695, %v1778_v2  ;;  %v2238_v2 = vld [vmem:[#allocation11 + $0x100] sm:$0xff] }
 0x854   : > { %v2112_v5 = vpop.permute.xlu0 %2111 }
 0x855   : > { %3073 = vpow2.f32 %v1779_v3  ;;  %v2913_v3 = vpack.c.bf16 %v2255_v1, %v2254_v63 }
 0x856   : > { %3075 = vrcp.f32 %v1179_v49 }
 0x85f   : > { %v3074_v4 = vpop.eup %3073 }
 0x860   : > { %2763 = vmatmul.mubr.msk.f32.vlgmr.msra.gmra.mrb[22].mxu1 %vm682_vm2, %v3074_v4  ;;  %v1781_v13 = vsel %vm682_vm2, %v3074_v4, 0.0  ;;  %v3076_v58 = vpop.eup %3075  ;;  %v2239_v4 = vld [vmem:[#allocation11 + $0x108] sm:$0xff] }
 0x861   : > { %2771 = vmatpush3.msra.mxu1 %v3770_v19  ;;  %1782 = vadd.xlane.f32.xlu1 %v1781_v13  ;;  %v1258_v61 = vmul.f32 %v3076_v58, %v3754_v11  ;;  %v2256_v13 = vld [vmem:[#allocation11 + $0x190] sm:$0xff]  ;;  %v2921_v11 = vpack.c.bf16 %v2259_v15, %v2258_v14 }
 0x862   : > { %2772 = vmatprep.mubr.msk.f32.mxu1 %vm3352_vm1, %v3351_v0  ;;  %2780 = vmatprep.subr.mxu1 %v3351_v0  ;;  %v2268_v58 = vld [vmem:[#allocation11 + $0x1f0] sm:$0xff] }
 0x864   : > { %2773 = vmatmul.mubr.msk.f32.vlgmr.msra.gmra.mrb[24].mxu1 %vm682_vm2, %v3072_v55  ;;  %v2221_v55 = vld [vmem:[#allocation11 + $0x78] sm:$0xff] }
 0x865   : > { %2781 = vmatpush3.msra.mxu1 %v2112_v5  ;;  %1016 = vadd.xlane.f32.xlu1 %v1015_v6  ;;  %v2911_v57 = vpack.c.bf16 %v2221_v55, %v2220_v54  ;;  %v2257_v5 = vld [vmem:[#allocation11 + $0x198] sm:$0xff]  ;;  %v2915_v6 = vpack.c.bf16 %v2239_v4, %v2238_v2 }
 0x866   : > { %2782 = vmatprep.mubr.msk.f32.mxu1 %vm3352_vm1, %v3351_v0  ;;  %v2227_v0 = vld [vmem:[#allocation11 + $0xa8] sm:$0xff]  ;;  %2914 = vmatprep.subr.bf16.mxu1 %v2913_v3 }
 0x867   : > { %v2889_v19 = vpack.c.bf16 %v2227_v0, %v2226_v17  ;;  %v2261_v17 = vld [vmem:[#allocation11 + $0x1b8] sm:$0xff]  ;;  %v2923_v0 = vpack.c.bf16 %v2243_v20, %v2242_v16 }
 0x868   : > { %2783 = vmatmul.mubr.msk.f32.vlgmr.msra.gmra.mrb[26].mxu1 %vm682_vm2, %v3070_v46  ;;  %v2218_v46 = vld [vmem:[#allocation11 + $0x60] sm:$0xff] }
 0x869   : > { %690 = vadd.xlane.f32.xlu1 %v689_v8  ;;  %2890 = vmatprep.subr.bf16.mxu0 %v2889_v19  ;;  %v2907_v50 = vpack.c.bf16 %v2219_v47, %v2218_v46  ;;  %v2917_v8 = vpack.c.bf16 %v2257_v5, %v2256_v13  ;;  %v2925_v19 = vpack.c.bf16 %v2261_v17, %v2260_v56 }
 0x86a   : > { %2892 = vmatpush3.bf16.msra.mxu0 %v2891_v23  ;;  %2916 = vmatpush3.bf16.msra.mxu1 %v2915_v6  ;;  %v2262_v23 = vld [vmem:[#allocation11 + $0x1c0] sm:$0xff] }
 0x86b   : > { %2894 = vmatprep.subr.bf16.mxu0 %v2893_v24  ;;  %2918 = vmatprep.subr.bf16.mxu1 %v2917_v8  ;;  %v2929_v24 = vpack.c.bf16 %v2263_v34, %v2262_v23  ;;  %v2598_v23 = vld [vmem:[#allocation12] ss:$0 sm:$0xff] }
 0x86d   : > { %1620 = vadd.xlane.f32.xlu1 %v1619_v10  ;;  %v2240_v10 = vld [vmem:[#allocation11 + $0x110] sm:$0xff] }
 0x86e   : > { %2896 = vmatpush3.bf16.msra.mxu0 %v2895_v28  ;;  %v2264_v28 = vld [vmem:[#allocation11 + $0x1d0] sm:$0xff] }
 0x86f   : > { %2898 = vmatprep.subr.bf16.mxu0 %v2897_v31  ;;  %v2933_v31 = vpack.c.bf16 %v2265_v29, %v2264_v28 }
 0x872   : > { %2900 = vmatpush3.bf16.msra.mxu0 %v2899_v37  ;;  %v2267_v37 = vld [vmem:[#allocation11 + $0x1e8] sm:$0xff] }
 0x873   : > { %2902 = vmatprep.subr.bf16.mxu0 %v2901_v41  ;;  %v2937_v39 = vpack.c.bf16 %v2267_v37, %v2266_v35  ;;  %v2251_v41 = vld [vmem:[#allocation11 + $0x168] sm:$0xff] }
 0x874   : > { %v2939_v42 = vpack.c.bf16 %v2251_v41, %v2250_v40 }
 0x876   : > { %2904 = vmatpush3.bf16.msra.mxu0 %v2903_v44 }
 0x877   : > { %2906 = vmatprep.subr.bf16.mxu0 %v2905_v45 }
 0x87a   : > { %2908 = vmatpush3.bf16.msra.mxu0 %v2907_v50 }
 0x87b   : > { %2910 = vmatprep.subr.bf16.mxu0 %v2909_v53 }
 0x87e   : > { %2912 = vmatpush3.bf16.msra.mxu0 %v2911_v57 }
 0x885   : > { %v853_v51 = vpop.xlane.xlu0 %852 }
 0x886   : > { %3077 = vrcp.f32 %v853_v51 }
 0x889   : > { %v1947_v47 = vpop.xlane.xlu0 %1946 }
 0x890   : > { %v3078_v59 = vpop.eup %3077 }
 0x891   : > { %v932_v60 = vmul.f32 %v3078_v59, %v3750_v7  ;;  %v2919_v7 = vpack.c.bf16 %v2241_v12, %v2240_v10  ;;  %v2269_v59 = vld [vmem:[#allocation11 + $0x1f8] sm:$0xff] }
 0x893   : > { %v3049_v62 = vpack.i.bf16 %v932_v60, %v1258_v61  ;;  %2920 = vmatpush3.bf16.msra.mxu1 %v2919_v7  ;;  %v2941_v60 = vpack.c.bf16 %v2269_v59, %v2268_v58  ;;  %v2252_v61 = vld [vmem:[#allocation11 + $0x170] sm:$0xff] }
 0x894   : > { %2922 = vmatprep.subr.bf16.mxu1 %v2921_v11 }
 0x895   : > { %3050 = vrot.lane.b32.xlu0 %v3049_v62, %s3353_s28  ;;  %v2253_v62 = vld [vmem:[#allocation11 + $0x178] sm:$0xff] }
 0x896   : > { %v2943_v1 = vpack.c.bf16 %v2253_v62, %v2252_v61 }
 0x897   : > { %2924 = vmatpush3.bf16.msra.mxu1 %v2923_v0 }
 0x898   : > { %2926 = vmatprep.subr.bf16.mxu1 %v2925_v19 }
 0x89b   : > { %2928 = vmatpush3.bf16.msra.mxu1 %v2927_v18 }
 0x89c   : > { %2930 = vmatprep.subr.bf16.mxu1 %v2929_v24 }
 0x89f   : > { %2932 = vmatpush3.bf16.msra.mxu1 %v2931_v30 }
 0x8a0   : > { %2934 = vmatprep.subr.bf16.mxu1 %v2933_v31 }
 0x8a3   : > { %2936 = vmatpush3.bf16.msra.mxu1 %v2935_v38 }
 0x8a4   : > { %2938 = vmatprep.subr.bf16.mxu1 %v2937_v39 }
 0x8a7   : > { %2940 = vmatpush3.bf16.msra.mxu1 %v2939_v42 }
 0x8a8   : > { %2942 = vmatprep.subr.bf16.mxu1 %v2941_v60 }
 0x8ab   : > { %2944 = vmatpush3.bf16.msra.mxu1 %v2943_v1 }
 0x8ee   : > { %v1783_v44 = vpop.xlane.xlu1 %1782 }
 0x8f2   : > { %v1017_v45 = vpop.xlane.xlu1 %1016 }
 0x8f3   : > { %3079 = vrcp.f32 %v1017_v45 }
 0x8f6   : > { %v691_v46 = vpop.xlane.xlu1 %690 }
 0x8f7   : > { %3081 = vrcp.f32 %v691_v46 }
 0x8f8   : > { %3083 = vrcp.f32 %v2109_v43 }
 0x8f9   : > { %3085 = vrcp.f32 %v1783_v44 }
 0x8fa   : > { %v1621_v12 = vpop.xlane.xlu1 %1620 }
 0x8fb   : > { %3087 = vrcp.f32 %v1621_v12 }
 0x8fc   : > { %3089 = vrcp.f32 %v1947_v47 }
 0x8fd   : > { %v3080_v49 = vpop.eup %3079 }
 0x8fe   : > { %v1092_v53 = vmul.f32 %v3080_v49, %v3752_v9 }
 0x901   : > { %v3082_v50 = vpop.eup %3081 }
 0x902   : > { %v766_v54 = vmul.f32 %v3082_v50, %v3711_v36  ;;  %v3084_v3 = vpop.eup %3083 }
 0x903   : > { %v3086_v4 = vpop.eup %3085 }
 0x905   : > { %v3088_v14 = vpop.eup %3087 }
 0x906   : > { %v3090_v15 = vpop.eup %3089  ;;  %v1696_v56 = vmul.f32 %v3088_v14, %v3794_v48 }
 0x907   : > { %v3051_v51 = vpop.permute.xlu0 %3050 }
 0x908   : > { %v3053_v27 = vunpack.i.h.bf16 %v3051_v51  ;;  %v3052_v52 = vunpack.i.l.bf16 %v3051_v51 }
 0x90a   : > { %v1268_v55 = vsel %vm355_vm0, %v1092_v53, %v3052_v52  ;;  %v1267_v57 = vsel %vm355_vm0, %v766_v54, %v3053_v27 }
 0x90b   : > { %2341 = vmatprep.mubr.f32.mxu0 %v1268_v55 }
 0x90c   : > { %2342 = vmatmul.mubr.f32.vlgmr.msra.gmra.mrb[16].mxu0 %v1267_v57 }
 0x933   : > { %v1857_v63 = vpop.f32.mrb[22].mxu1 }
 0x934   : > { %v2764_v2 = vpop.f32.mrb[23].mxu1  ;;  %v1862_v5 = vmul.f32 %v3086_v4, %v1857_v63 }
 0x937   : > { %v2017_v9 = vpop.f32.mrb[24].mxu1 }
 0x938   : > { %v2774_v36 = vpop.f32.mrb[25].mxu1  ;;  %v2022_v11 = vmul.f32 %v3090_v15, %v2017_v9 }
 0x93b   : > { %v2183_v13 = vpop.f32.mrb[26].mxu1 }
 0x93c   : > { %v2188_v6 = vmul.f32 %v3084_v3, %v2183_v13  ;;  %v2784_v8 = vpop.f32.mrb[27].mxu1 }
 0x93e   : > { %v3054_v10 = vpack.i.bf16 %v1862_v5, %v2188_v6 }
 0x940   : > { %3055 = vrot.lane.b32.xlu1 %v3054_v10, %s3353_s28 }
 0x9b2   : > { %v3056_v7 = vpop.permute.xlu1 %3055 }
 0x9b3   : > { %v3058_v16 = vunpack.i.h.bf16 %v3056_v7  ;;  %v3057_v20 = vunpack.i.l.bf16 %v3056_v7 }
 0x9b5   : > { %v2198_v17 = vsel %vm355_vm0, %v2022_v11, %v3057_v20  ;;  %v2197_v0 = vsel %vm355_vm0, %v1696_v56, %v3058_v16 }
 0x9b6   : > { %2411 = vmatprep.mubr.f32.mxu1 %v2198_v17 }
 0x9b7   : > { %2412 = vmatmul.mubr.f32.vlgmr.msra.gmra.mrb[28].mxu1 %v2197_v0 }
 0x9df   : > { %v2667_v19 = vpop.f32.mrb[16].mxu0 }
 0x9e0   : > { %v2668_v21 = vpop.f32.mrb[17].mxu0 }
 0x9e1   : > { %v2669_v22 = vadd.f32 %v2668_v21, %v2667_v19 }
 0x9e3   : > { %v2344_v24 = vadd.f32 %v2669_v22, %v2598_v23 }
 0xa8a   : > { %v2702_v34 = vpop.f32.mrb[28].mxu1 }
 0xa8b   : > { %v2703_v18 = vpop.f32.mrb[29].mxu1 }
 0xa8c   : > { %v2704_v48 = vadd.f32 %v2703_v18, %v2702_v34 }
 0xa8e   : > { %v2414_v25 = vadd.f32 %v2704_v48, %v2344_v24 }
 0xa90   : > { %2417 = vst.msk [vmem:[%s337_s11] sm:$0xff] %vm355_vm0, %v2414_v25 }
 0xa91   : > { %3274 = shalt.err (!%p3271_p3)
}
 0xa92   : > { %s3275_s15 = scalar_lea.hbm %s3835_s8, 128  ;;  %s3279_s29 = scalar_lea.hbm %s3886_s6, 256 }
 0xa93   : > { %p3276_p6 = scmp.ne.s32.totalorder %s3835_s8, %s3275_s15  ;;  %p3280_p8 = scmp.lt.u32.totalorder %s3835_s8, %s3886_s6 }
 0xa94   : > { %p3281_p5 = scmp.lt.u32.totalorder %s3279_s29, %s3275_s15  ;;  %p3283_p7 = scmp.lt.u32.totalorder %s3275_s15, %s3835_s8 }
 0xa95   : > { %p3277_p10 = pnand %p3276_p6, %p3905_p4 }
 0xa96   : > { %p3282_p9 = por %p3281_p5, %p3280_p8 }
 0xa97   : > { %p3278_p11 = pneg %p3277_p10 }
 0xa98   : > { %p3284_p12 = por %p3283_p7, %p3282_p9 }
 0xa9a   : > { %p3285_p1 = pnand %p3284_p12, %p3278_p11 }
 0xa9c   : > { %3288 = shalt.err (!%p3285_p1)
}
 0xa9d   : > { %2967 = dma.vmem_to_hbm [thread:$0]  (%p3905_p4), %s3837_s12, 128, %s3835_s8, %s2419_s26  }
 0xa9e PF: > { %s2444_s11 = sand.u32 1, %s3327_s21   ;;  %p3906_p13 = scmp.ne.s32.totalorder %s3896_s18, 0 }
 0xa9f   : > { %p3907_p0 = scmp.ge.s32.totalorder %s3339_s24, 2  ;;  %s2445_s9 = scalar_lea.sflag [#allocation5], %s2444_s11 }
 0xaa1   : > { %p2990_p2 = pnand %p3907_p0, %p3906_p13 }
 0xaa3   : > { %3322 = dma.done.wait (!%p2990_p2), %s2445_s9, 128  }
 0xaa4   : > { %3324 = vsyncadd (!%p2990_p2), %s2445_s9, 4294967168  ;;  %p22_p3 = scmp.ge.s32.totalorder %s3557_s7, 4   ;;  %s3908_s21 = smov %s3331_s22 }
 0xaa5   : > { %s3909_s22 = smov %s3335_s23  ;;  %s3910_s23 = smov %s3569_s30 }
 0xaa6   : > { %s3911_s24 = smov %s3557_s7  ;;  %24 = sbr.rel (!%p22_p3) target bundleno = 8 (0x8), region = 113 }
 0xaad   :  { %2450 = vsyncpa [#allocation4], 1 }
 0xaae   :  { %2452 = vsyncpa [#allocation4 + $0x1], 1 }
 0xaaf   :  { %2453 = vsyncpa [#allocation7], 1 }
 0xab0   :  { %2454 = vsyncpa [#allocation10], 1 }
 0xab1   :  { %2455 = vsyncpa [#allocation13], 1 }
 0xab2   :  { %2456 = vsyncpa [#allocation5], 1 }
 0xab3   :  { %2458 = vsyncpa [#allocation5 + $0x1], 1 }

</bundles_post_ra>
